<compile_context>
chip_gen: v7x
topology: tpu7x:2x2x1
jax: 0.10.0
libtpu: 0.0.40
codegen_flags: <defaults>
</compile_context>

<pallas_src>
import functools

import numpy as np
import jax
import jax.numpy as jnp
from jax import lax
from jax.experimental import pallas as pl
from jax.experimental.pallas import tpu as pltpu

INPUT_SIZE = 28
HIDDEN = 64
NUM_CLASSES = 10
HP = 128          # lane-aligned (padded) hidden width: each gate = one 128-lane slab
SUBLANE = 8       # pad batch to a multiple of this


def _lstm_fc_kernel(x_ref, wih_ref, whh_ref, b_ref, wfc_ref, bfc_ref, out_ref,
                    *, seq_len, batch, hp):
    """Whole LSTM + FC head in one invocation.

    x_ref   : (T*Bp, D)  time-major, batch-padded input
    wih_ref : (D, 4*HP)  input->gate weights, gate slabs lane-aligned
    whh_ref : (HP, 4*HP) hidden->gate weights (rows H: zero-padded)
    b_ref   : (1, 4*HP)  combined LSTM bias (b_ih + b_hh), gate slabs padded
    wfc_ref : (HP, C)    FC head weights (rows H: zero-padded)
    bfc_ref : (1, C)     FC bias
    out_ref : (Bp, C)
    """
    # Hoisted input projection for ALL timesteps (one matmul) + one-time bias
    # broadcast. Row block t*Bp:(t+1)*Bp is timestep t for the whole batch.
    gates_x = jnp.dot(x_ref[...], wih_ref[...],
                      preferred_element_type=jnp.float32) + b_ref[...]
    whh = whh_ref[...]

    h = jnp.zeros((batch, hp), jnp.float32)
    c = jnp.zeros((batch, hp), jnp.float32)

    # Static, fully unrolled recurrence; h/c stay in vregs.
    for t in range(seq_len):
        g_t = gates_x[t * batch:(t + 1) * batch, :] + jnp.dot(
            h, whh, preferred_element_type=jnp.float32)
        # PyTorch gate order [i, f, g, o]; each slab is a full 128-lane slice.
        i_g = jax.nn.sigmoid(g_t[:, 0 * hp:1 * hp])
        f_g = jax.nn.sigmoid(g_t[:, 1 * hp:2 * hp])
        g_g = jnp.tanh(g_t[:, 2 * hp:3 * hp])
        o_g = jax.nn.sigmoid(g_t[:, 3 * hp:4 * hp])
        c = f_g * c + i_g * g_g
        h = o_g * jnp.tanh(c)

    logits = jnp.dot(h, wfc_ref[...],
                     preferred_element_type=jnp.float32) + bfc_ref[...]
    out_ref[...] = logits.astype(out_ref.dtype)


def _pad_gate_cols(w, hidden, hp):
    """(rows, 4*H) -> (rows, 4*HP): each gate's H columns start a 128-lane slab."""
    rows = w.shape[0]
    w4 = w.reshape(rows, 4, hidden)
    return jnp.pad(w4, ((0, 0), (0, 0), (0, hp - hidden))).reshape(rows, 4 * hp)


@jax.jit
def rnn_forward(x_btd, w_ih, w_hh, b_ih, b_hh, w_fc, b_fc):
    """x_btd: (B, T, D) float32 (batch_first, like torch). Returns (B, 10)."""
    B, T, D = x_btd.shape
    H = w_hh.shape[1]
    B_pad = ((B + SUBLANE - 1) // SUBLANE) * SUBLANE

    # Time-major, batch padded to sublane width, flattened to (T*Bp, D).
    x_t = jnp.transpose(x_btd, (1, 0, 2))                     # (T, B, D)
    x_t = jnp.pad(x_t, ((0, 0), (0, B_pad - B), (0, 0)))      # (T, Bp, D)
    x_flat = x_t.reshape(T * B_pad, D)

    # Lane-aligned, zero-padded parameter layout.
    w_ih_p = _pad_gate_cols(jnp.transpose(w_ih), H, HP)               # (D, 4HP)
    w_hh_p = _pad_gate_cols(jnp.transpose(w_hh), H, HP)               # (H, 4HP)
    w_hh_p = jnp.pad(w_hh_p, ((0, HP - H), (0, 0)))                   # (HP, 4HP)
    b_p = _pad_gate_cols((b_ih + b_hh).reshape(1, 4 * H), H, HP)      # (1, 4HP)
    w_fc_p = jnp.pad(jnp.transpose(w_fc), ((0, HP - H), (0, 0)))      # (HP, C)
    b_fc_p = b_fc.reshape(1, NUM_CLASSES)                             # (1, C)

    kernel = functools.partial(_lstm_fc_kernel,
                               seq_len=T, batch=B_pad, hp=HP)

    out_pad = pl.pallas_call(
        kernel,
        out_shape=jax.ShapeDtypeStruct((B_pad, NUM_CLASSES), jnp.float32),
        in_specs=[pl.BlockSpec(memory_space=pltpu.MemorySpace.VMEM)] * 6,
        out_specs=pl.BlockSpec(memory_space=pltpu.MemorySpace.VMEM),
    )(x_flat, w_ih_p, w_hh_p, b_p, w_fc_p, b_fc_p)

    return out_pad[:B]


def _reference(x_btd, w_ih, w_hh, b_ih, b_hh, w_fc, b_fc):
    """Pure-JAX reference matching torch nn.LSTM (batch_first) + nn.Linear."""
    B, T, D = x_btd.shape
    H = w_hh.shape[1]

    def step(carry, x_t):
        h, c = carry
        gates = x_t @ w_ih.T + h @ w_hh.T + b_ih + b_hh
        i = jax.nn.sigmoid(gates[:, 0 * H:1 * H])
        f = jax.nn.sigmoid(gates[:, 1 * H:2 * H])
        g = jnp.tanh(gates[:, 2 * H:3 * H])
        o = jax.nn.sigmoid(gates[:, 3 * H:4 * H])
        c = f * c + i * g
        h = o * jnp.tanh(c)
        return (h, c), None

    h0 = jnp.zeros((B, H), jnp.float32)
    c0 = jnp.zeros((B, H), jnp.float32)
    (hT, _), _ = lax.scan(step, (h0, c0), jnp.transpose(x_btd, (1, 0, 2)))
    return hT @ w_fc.T + b_fc


if __name__ == "__main__":
    B, T, D, H = 2, 8, INPUT_SIZE, HIDDEN

    key = jax.random.PRNGKey(0)
    kx, k1, k2, k3, k4, k5, k6 = jax.random.split(key, 7)

    # PyTorch-style U(-1/sqrt(H), 1/sqrt(H)) init, torch weight layouts.
    s = 1.0 / np.sqrt(H)
    x = jax.random.normal(kx, (B, T, D), jnp.float32)
    w_ih = jax.random.uniform(k1, (4 * H, D), jnp.float32, -s, s)   # torch W_ih
    w_hh = jax.random.uniform(k2, (4 * H, H), jnp.float32, -s, s)   # torch W_hh
    b_ih = jax.random.uniform(k3, (4 * H,), jnp.float32, -s, s)
    b_hh = jax.random.uniform(k4, (4 * H,), jnp.float32, -s, s)
    w_fc = jax.random.uniform(k5, (NUM_CLASSES, H), jnp.float32, -s, s)
    b_fc = jax.random.uniform(k6, (NUM_CLASSES,), jnp.float32, -s, s)

    out = rnn_forward(x, w_ih, w_hh, b_ih, b_hh, w_fc, b_fc)
    out = jax.block_until_ready(out)

    ref = _reference(x, w_ih, w_hh, b_ih, b_hh, w_fc, b_fc)
    np.testing.assert_allclose(np.asarray(out), np.asarray(ref),
                               rtol=1e-5, atol=1e-5)
    print("KERNEL_OK")
</pallas_src>

<mosaic_0001>
module attributes {stable_mosaic.version = 11 : i64} {
  func.func @_lstm_fc_kernel(%arg0: memref<64x28xf32, #tpu.memory_space<vmem>>, %arg1: memref<28x512xf32, #tpu.memory_space<vmem>>, %arg2: memref<128x512xf32, #tpu.memory_space<vmem>>, %arg3: memref<1x512xf32, #tpu.memory_space<vmem>>, %arg4: memref<128x10xf32, #tpu.memory_space<vmem>>, %arg5: memref<1x10xf32, #tpu.memory_space<vmem>>, %arg6: memref<8x10xf32, #tpu.memory_space<vmem>>) attributes {dimension_semantics = [], scalar_prefetch = 0 : i64, scratch_operands = 0 : i64, tpu.core_type = #tpu.core_type<tc>} {
    %c0 = arith.constant 0 : index
    %c0_0 = arith.constant 0 : index
    %0 = vector.load %arg0[%c0, %c0_0] : memref<64x28xf32, #tpu.memory_space<vmem>>, vector<64x28xf32>
    %c0_1 = arith.constant 0 : index
    %c0_2 = arith.constant 0 : index
    %1 = vector.load %arg1[%c0_1, %c0_2] : memref<28x512xf32, #tpu.memory_space<vmem>>, vector<28x512xf32>
    %cst = arith.constant dense<0.000000e+00> : vector<64x512xf32>
    %2 = tpu.matmul %0, %1, %cst {dimension_numbers = #tpu.dot_dimension_numbers<[1], [0], [0], [1], [0, 0, 1, 1], [], []>} : vector<64x28xf32>, vector<28x512xf32>, vector<64x512xf32> -> vector<64x512xf32>
    %c0_3 = arith.constant 0 : index
    %c0_4 = arith.constant 0 : index
    %3 = vector.load %arg3[%c0_3, %c0_4] : memref<1x512xf32, #tpu.memory_space<vmem>>, vector<1x512xf32>
    %4 = vector.broadcast %3 : vector<1x512xf32> to vector<64x512xf32>
    %5 = arith.addf %2, %4 : vector<64x512xf32>
    %c0_5 = arith.constant 0 : index
    %c0_6 = arith.constant 0 : index
    %6 = vector.load %arg2[%c0_5, %c0_6] : memref<128x512xf32, #tpu.memory_space<vmem>>, vector<128x512xf32>
    %cst_7 = arith.constant 0.000000e+00 : f32
    %7 = vector.broadcast %cst_7 : f32 to vector<8x128xf32>
    %cst_8 = arith.constant 0.000000e+00 : f32
    %8 = vector.broadcast %cst_8 : f32 to vector<8x128xf32>
    %9 = vector.extract_strided_slice %5 {offsets = [0, 0], sizes = [8, 512], strides = [1, 1]} : vector<64x512xf32> to vector<8x512xf32>
    %cst_9 = arith.constant dense<0.000000e+00> : vector<8x512xf32>
    %10 = tpu.matmul %7, %6, %cst_9 {dimension_numbers = #tpu.dot_dimension_numbers<[1], [0], [0], [1], [0, 0, 1, 1], [], []>} : vector<8x128xf32>, vector<128x512xf32>, vector<8x512xf32> -> vector<8x512xf32>
    %11 = arith.addf %9, %10 : vector<8x512xf32>
    %12 = vector.extract_strided_slice %11 {offsets = [0, 0], sizes = [8, 128], strides = [1, 1]} : vector<8x512xf32> to vector<8x128xf32>
    %13 = arith.negf %12 : vector<8x128xf32>
    %14 = math.exp %13 : vector<8x128xf32>
    %cst_10 = arith.constant 1.000000e+00 : f32
    %15 = vector.broadcast %cst_10 : f32 to vector<8x128xf32>
    %16 = arith.addf %15, %14 : vector<8x128xf32>
    %17 = arith.divf %15, %16 : vector<8x128xf32>
    %18 = vector.extract_strided_slice %11 {offsets = [0, 128], sizes = [8, 128], strides = [1, 1]} : vector<8x512xf32> to vector<8x128xf32>
    %19 = arith.negf %18 : vector<8x128xf32>
    %20 = math.exp %19 : vector<8x128xf32>
    %cst_11 = arith.constant 1.000000e+00 : f32
    %21 = vector.broadcast %cst_11 : f32 to vector<8x128xf32>
    %22 = arith.addf %21, %20 : vector<8x128xf32>
    %23 = arith.divf %21, %22 : vector<8x128xf32>
    %24 = vector.extract_strided_slice %11 {offsets = [0, 256], sizes = [8, 128], strides = [1, 1]} : vector<8x512xf32> to vector<8x128xf32>
    %25 = math.tanh %24 : vector<8x128xf32>
    %26 = vector.extract_strided_slice %11 {offsets = [0, 384], sizes = [8, 128], strides = [1, 1]} : vector<8x512xf32> to vector<8x128xf32>
    %27 = arith.negf %26 : vector<8x128xf32>
    %28 = math.exp %27 : vector<8x128xf32>
    %cst_12 = arith.constant 1.000000e+00 : f32
    %29 = vector.broadcast %cst_12 : f32 to vector<8x128xf32>
    %30 = arith.addf %29, %28 : vector<8x128xf32>
    %31 = arith.divf %29, %30 : vector<8x128xf32>
    %32 = arith.mulf %23, %8 : vector<8x128xf32>
    %33 = arith.mulf %17, %25 : vector<8x128xf32>
    %34 = arith.addf %32, %33 : vector<8x128xf32>
    %35 = math.tanh %34 : vector<8x128xf32>
    %36 = arith.mulf %31, %35 : vector<8x128xf32>
    %37 = vector.extract_strided_slice %5 {offsets = [8, 0], sizes = [8, 512], strides = [1, 1]} : vector<64x512xf32> to vector<8x512xf32>
    %cst_13 = arith.constant dense<0.000000e+00> : vector<8x512xf32>
    %38 = tpu.matmul %36, %6, %cst_13 {dimension_numbers = #tpu.dot_dimension_numbers<[1], [0], [0], [1], [0, 0, 1, 1], [], []>} : vector<8x128xf32>, vector<128x512xf32>, vector<8x512xf32> -> vector<8x512xf32>
    %39 = arith.addf %37, %38 : vector<8x512xf32>
    %40 = vector.extract_strided_slice %39 {offsets = [0, 0], sizes = [8, 128], strides = [1, 1]} : vector<8x512xf32> to vector<8x128xf32>
    %41 = arith.negf %40 : vector<8x128xf32>
    %42 = math.exp %41 : vector<8x128xf32>
    %cst_14 = arith.constant 1.000000e+00 : f32
    %43 = vector.broadcast %cst_14 : f32 to vector<8x128xf32>
    %44 = arith.addf %43, %42 : vector<8x128xf32>
    %45 = arith.divf %43, %44 : vector<8x128xf32>
    %46 = vector.extract_strided_slice %39 {offsets = [0, 128], sizes = [8, 128], strides = [1, 1]} : vector<8x512xf32> to vector<8x128xf32>
    %47 = arith.negf %46 : vector<8x128xf32>
    %48 = math.exp %47 : vector<8x128xf32>
    %cst_15 = arith.constant 1.000000e+00 : f32
    %49 = vector.broadcast %cst_15 : f32 to vector<8x128xf32>
    %50 = arith.addf %49, %48 : vector<8x128xf32>
    %51 = arith.divf %49, %50 : vector<8x128xf32>
    %52 = vector.extract_strided_slice %39 {offsets = [0, 256], sizes = [8, 128], strides = [1, 1]} : vector<8x512xf32> to vector<8x128xf32>
    %53 = math.tanh %52 : vector<8x128xf32>
    %54 = vector.extract_strided_slice %39 {offsets = [0, 384], sizes = [8, 128], strides = [1, 1]} : vector<8x512xf32> to vector<8x128xf32>
    %55 = arith.negf %54 : vector<8x128xf32>
    %56 = math.exp %55 : vector<8x128xf32>
    %cst_16 = arith.constant 1.000000e+00 : f32
    %57 = vector.broadcast %cst_16 : f32 to vector<8x128xf32>
    %58 = arith.addf %57, %56 : vector<8x128xf32>
    %59 = arith.divf %57, %58 : vector<8x128xf32>
    %60 = arith.mulf %51, %34 : vector<8x128xf32>
    %61 = arith.mulf %45, %53 : vector<8x128xf32>
    %62 = arith.addf %60, %61 : vector<8x128xf32>
    %63 = math.tanh %62 : vector<8x128xf32>
    %64 = arith.mulf %59, %63 : vector<8x128xf32>
    %65 = vector.extract_strided_slice %5 {offsets = [16, 0], sizes = [8, 512], strides = [1, 1]} : vector<64x512xf32> to vector<8x512xf32>
    %cst_17 = arith.constant dense<0.000000e+00> : vector<8x512xf32>
    %66 = tpu.matmul %64, %6, %cst_17 {dimension_numbers = #tpu.dot_dimension_numbers<[1], [0], [0], [1], [0, 0, 1, 1], [], []>} : vector<8x128xf32>, vector<128x512xf32>, vector<8x512xf32> -> vector<8x512xf32>
    %67 = arith.addf %65, %66 : vector<8x512xf32>
    %68 = vector.extract_strided_slice %67 {offsets = [0, 0], sizes = [8, 128], strides = [1, 1]} : vector<8x512xf32> to vector<8x128xf32>
    %69 = arith.negf %68 : vector<8x128xf32>
    %70 = math.exp %69 : vector<8x128xf32>
    %cst_18 = arith.constant 1.000000e+00 : f32
    %71 = vector.broadcast %cst_18 : f32 to vector<8x128xf32>
    %72 = arith.addf %71, %70 : vector<8x128xf32>
    %73 = arith.divf %71, %72 : vector<8x128xf32>
    %74 = vector.extract_strided_slice %67 {offsets = [0, 128], sizes = [8, 128], strides = [1, 1]} : vector<8x512xf32> to vector<8x128xf32>
    %75 = arith.negf %74 : vector<8x128xf32>
    %76 = math.exp %75 : vector<8x128xf32>
    %cst_19 = arith.constant 1.000000e+00 : f32
    %77 = vector.broadcast %cst_19 : f32 to vector<8x128xf32>
    %78 = arith.addf %77, %76 : vector<8x128xf32>
    %79 = arith.divf %77, %78 : vector<8x128xf32>
    %80 = vector.extract_strided_slice %67 {offsets = [0, 256], sizes = [8, 128], strides = [1, 1]} : vector<8x512xf32> to vector<8x128xf32>
    %81 = math.tanh %80 : vector<8x128xf32>
    %82 = vector.extract_strided_slice %67 {offsets = [0, 384], sizes = [8, 128], strides = [1, 1]} : vector<8x512xf32> to vector<8x128xf32>
    %83 = arith.negf %82 : vector<8x128xf32>
    %84 = math.exp %83 : vector<8x128xf32>
    %cst_20 = arith.constant 1.000000e+00 : f32
    %85 = vector.broadcast %cst_20 : f32 to vector<8x128xf32>
    %86 = arith.addf %85, %84 : vector<8x128xf32>
    %87 = arith.divf %85, %86 : vector<8x128xf32>
    %88 = arith.mulf %79, %62 : vector<8x128xf32>
    %89 = arith.mulf %73, %81 : vector<8x128xf32>
    %90 = arith.addf %88, %89 : vector<8x128xf32>
    %91 = math.tanh %90 : vector<8x128xf32>
    %92 = arith.mulf %87, %91 : vector<8x128xf32>
    %93 = vector.extract_strided_slice %5 {offsets = [24, 0], sizes = [8, 512], strides = [1, 1]} : vector<64x512xf32> to vector<8x512xf32>
    %cst_21 = arith.constant dense<0.000000e+00> : vector<8x512xf32>
    %94 = tpu.matmul %92, %6, %cst_21 {dimension_numbers = #tpu.dot_dimension_numbers<[1], [0], [0], [1], [0, 0, 1, 1], [], []>} : vector<8x128xf32>, vector<128x512xf32>, vector<8x512xf32> -> vector<8x512xf32>
    %95 = arith.addf %93, %94 : vector<8x512xf32>
    %96 = vector.extract_strided_slice %95 {offsets = [0, 0], sizes = [8, 128], strides = [1, 1]} : vector<8x512xf32> to vector<8x128xf32>
    %97 = arith.negf %96 : vector<8x128xf32>
    %98 = math.exp %97 : vector<8x128xf32>
    %cst_22 = arith.constant 1.000000e+00 : f32
    %99 = vector.broadcast %cst_22 : f32 to vector<8x128xf32>
    %100 = arith.addf %99, %98 : vector<8x128xf32>
    %101 = arith.divf %99, %100 : vector<8x128xf32>
    %102 = vector.extract_strided_slice %95 {offsets = [0, 128], sizes = [8, 128], strides = [1, 1]} : vector<8x512xf32> to vector<8x128xf32>
    %103 = arith.negf %102 : vector<8x128xf32>
    %104 = math.exp %103 : vector<8x128xf32>
    %cst_23 = arith.constant 1.000000e+00 : f32
    %105 = vector.broadcast %cst_23 : f32 to vector<8x128xf32>
    %106 = arith.addf %105, %104 : vector<8x128xf32>
    %107 = arith.divf %105, %106 : vector<8x128xf32>
    %108 = vector.extract_strided_slice %95 {offsets = [0, 256], sizes = [8, 128], strides = [1, 1]} : vector<8x512xf32> to vector<8x128xf32>
    %109 = math.tanh %108 : vector<8x128xf32>
    %110 = vector.extract_strided_slice %95 {offsets = [0, 384], sizes = [8, 128], strides = [1, 1]} : vector<8x512xf32> to vector<8x128xf32>
    %111 = arith.negf %110 : vector<8x128xf32>
    %112 = math.exp %111 : vector<8x128xf32>
    %cst_24 = arith.constant 1.000000e+00 : f32
    %113 = vector.broadcast %cst_24 : f32 to vector<8x128xf32>
    %114 = arith.addf %113, %112 : vector<8x128xf32>
    %115 = arith.divf %113, %114 : vector<8x128xf32>
    %116 = arith.mulf %107, %90 : vector<8x128xf32>
    %117 = arith.mulf %101, %109 : vector<8x128xf32>
    %118 = arith.addf %116, %117 : vector<8x128xf32>
    %119 = math.tanh %118 : vector<8x128xf32>
    %120 = arith.mulf %115, %119 : vector<8x128xf32>
    %121 = vector.extract_strided_slice %5 {offsets = [32, 0], sizes = [8, 512], strides = [1, 1]} : vector<64x512xf32> to vector<8x512xf32>
    %cst_25 = arith.constant dense<0.000000e+00> : vector<8x512xf32>
    %122 = tpu.matmul %120, %6, %cst_25 {dimension_numbers = #tpu.dot_dimension_numbers<[1], [0], [0], [1], [0, 0, 1, 1], [], []>} : vector<8x128xf32>, vector<128x512xf32>, vector<8x512xf32> -> vector<8x512xf32>
    %123 = arith.addf %121, %122 : vector<8x512xf32>
    %124 = vector.extract_strided_slice %123 {offsets = [0, 0], sizes = [8, 128], strides = [1, 1]} : vector<8x512xf32> to vector<8x128xf32>
    %125 = arith.negf %124 : vector<8x128xf32>
    %126 = math.exp %125 : vector<8x128xf32>
    %cst_26 = arith.constant 1.000000e+00 : f32
    %127 = vector.broadcast %cst_26 : f32 to vector<8x128xf32>
    %128 = arith.addf %127, %126 : vector<8x128xf32>
    %129 = arith.divf %127, %128 : vector<8x128xf32>
    %130 = vector.extract_strided_slice %123 {offsets = [0, 128], sizes = [8, 128], strides = [1, 1]} : vector<8x512xf32> to vector<8x128xf32>
    %131 = arith.negf %130 : vector<8x128xf32>
    %132 = math.exp %131 : vector<8x128xf32>
    %cst_27 = arith.constant 1.000000e+00 : f32
    %133 = vector.broadcast %cst_27 : f32 to vector<8x128xf32>
    %134 = arith.addf %133, %132 : vector<8x128xf32>
    %135 = arith.divf %133, %134 : vector<8x128xf32>
    %136 = vector.extract_strided_slice %123 {offsets = [0, 256], sizes = [8, 128], strides = [1, 1]} : vector<8x512xf32> to vector<8x128xf32>
    %137 = math.tanh %136 : vector<8x128xf32>
    %138 = vector.extract_strided_slice %123 {offsets = [0, 384], sizes = [8, 128], strides = [1, 1]} : vector<8x512xf32> to vector<8x128xf32>
    %139 = arith.negf %138 : vector<8x128xf32>
    %140 = math.exp %139 : vector<8x128xf32>
    %cst_28 = arith.constant 1.000000e+00 : f32
    %141 = vector.broadcast %cst_28 : f32 to vector<8x128xf32>
    %142 = arith.addf %141, %140 : vector<8x128xf32>
    %143 = arith.divf %141, %142 : vector<8x128xf32>
    %144 = arith.mulf %135, %118 : vector<8x128xf32>
    %145 = arith.mulf %129, %137 : vector<8x128xf32>
    %146 = arith.addf %144, %145 : vector<8x128xf32>
    %147 = math.tanh %146 : vector<8x128xf32>
    %148 = arith.mulf %143, %147 : vector<8x128xf32>
    %149 = vector.extract_strided_slice %5 {offsets = [40, 0], sizes = [8, 512], strides = [1, 1]} : vector<64x512xf32> to vector<8x512xf32>
    %cst_29 = arith.constant dense<0.000000e+00> : vector<8x512xf32>
    %150 = tpu.matmul %148, %6, %cst_29 {dimension_numbers = #tpu.dot_dimension_numbers<[1], [0], [0], [1], [0, 0, 1, 1], [], []>} : vector<8x128xf32>, vector<128x512xf32>, vector<8x512xf32> -> vector<8x512xf32>
    %151 = arith.addf %149, %150 : vector<8x512xf32>
    %152 = vector.extract_strided_slice %151 {offsets = [0, 0], sizes = [8, 128], strides = [1, 1]} : vector<8x512xf32> to vector<8x128xf32>
    %153 = arith.negf %152 : vector<8x128xf32>
    %154 = math.exp %153 : vector<8x128xf32>
    %cst_30 = arith.constant 1.000000e+00 : f32
    %155 = vector.broadcast %cst_30 : f32 to vector<8x128xf32>
    %156 = arith.addf %155, %154 : vector<8x128xf32>
    %157 = arith.divf %155, %156 : vector<8x128xf32>
    %158 = vector.extract_strided_slice %151 {offsets = [0, 128], sizes = [8, 128], strides = [1, 1]} : vector<8x512xf32> to vector<8x128xf32>
    %159 = arith.negf %158 : vector<8x128xf32>
    %160 = math.exp %159 : vector<8x128xf32>
    %cst_31 = arith.constant 1.000000e+00 : f32
    %161 = vector.broadcast %cst_31 : f32 to vector<8x128xf32>
    %162 = arith.addf %161, %160 : vector<8x128xf32>
    %163 = arith.divf %161, %162 : vector<8x128xf32>
    %164 = vector.extract_strided_slice %151 {offsets = [0, 256], sizes = [8, 128], strides = [1, 1]} : vector<8x512xf32> to vector<8x128xf32>
    %165 = math.tanh %164 : vector<8x128xf32>
    %166 = vector.extract_strided_slice %151 {offsets = [0, 384], sizes = [8, 128], strides = [1, 1]} : vector<8x512xf32> to vector<8x128xf32>
    %167 = arith.negf %166 : vector<8x128xf32>
    %168 = math.exp %167 : vector<8x128xf32>
    %cst_32 = arith.constant 1.000000e+00 : f32
    %169 = vector.broadcast %cst_32 : f32 to vector<8x128xf32>
    %170 = arith.addf %169, %168 : vector<8x128xf32>
    %171 = arith.divf %169, %170 : vector<8x128xf32>
    %172 = arith.mulf %163, %146 : vector<8x128xf32>
    %173 = arith.mulf %157, %165 : vector<8x128xf32>
    %174 = arith.addf %172, %173 : vector<8x128xf32>
    %175 = math.tanh %174 : vector<8x128xf32>
    %176 = arith.mulf %171, %175 : vector<8x128xf32>
    %177 = vector.extract_strided_slice %5 {offsets = [48, 0], sizes = [8, 512], strides = [1, 1]} : vector<64x512xf32> to vector<8x512xf32>
    %cst_33 = arith.constant dense<0.000000e+00> : vector<8x512xf32>
    %178 = tpu.matmul %176, %6, %cst_33 {dimension_numbers = #tpu.dot_dimension_numbers<[1], [0], [0], [1], [0, 0, 1, 1], [], []>} : vector<8x128xf32>, vector<128x512xf32>, vector<8x512xf32> -> vector<8x512xf32>
    %179 = arith.addf %177, %178 : vector<8x512xf32>
    %180 = vector.extract_strided_slice %179 {offsets = [0, 0], sizes = [8, 128], strides = [1, 1]} : vector<8x512xf32> to vector<8x128xf32>
    %181 = arith.negf %180 : vector<8x128xf32>
    %182 = math.exp %181 : vector<8x128xf32>
    %cst_34 = arith.constant 1.000000e+00 : f32
    %183 = vector.broadcast %cst_34 : f32 to vector<8x128xf32>
    %184 = arith.addf %183, %182 : vector<8x128xf32>
    %185 = arith.divf %183, %184 : vector<8x128xf32>
    %186 = vector.extract_strided_slice %179 {offsets = [0, 128], sizes = [8, 128], strides = [1, 1]} : vector<8x512xf32> to vector<8x128xf32>
    %187 = arith.negf %186 : vector<8x128xf32>
    %188 = math.exp %187 : vector<8x128xf32>
    %cst_35 = arith.constant 1.000000e+00 : f32
    %189 = vector.broadcast %cst_35 : f32 to vector<8x128xf32>
    %190 = arith.addf %189, %188 : vector<8x128xf32>
    %191 = arith.divf %189, %190 : vector<8x128xf32>
    %192 = vector.extract_strided_slice %179 {offsets = [0, 256], sizes = [8, 128], strides = [1, 1]} : vector<8x512xf32> to vector<8x128xf32>
    %193 = math.tanh %192 : vector<8x128xf32>
    %194 = vector.extract_strided_slice %179 {offsets = [0, 384], sizes = [8, 128], strides = [1, 1]} : vector<8x512xf32> to vector<8x128xf32>
    %195 = arith.negf %194 : vector<8x128xf32>
    %196 = math.exp %195 : vector<8x128xf32>
    %cst_36 = arith.constant 1.000000e+00 : f32
    %197 = vector.broadcast %cst_36 : f32 to vector<8x128xf32>
    %198 = arith.addf %197, %196 : vector<8x128xf32>
    %199 = arith.divf %197, %198 : vector<8x128xf32>
    %200 = arith.mulf %191, %174 : vector<8x128xf32>
    %201 = arith.mulf %185, %193 : vector<8x128xf32>
    %202 = arith.addf %200, %201 : vector<8x128xf32>
    %203 = math.tanh %202 : vector<8x128xf32>
    %204 = arith.mulf %199, %203 : vector<8x128xf32>
    %205 = vector.extract_strided_slice %5 {offsets = [56, 0], sizes = [8, 512], strides = [1, 1]} : vector<64x512xf32> to vector<8x512xf32>
    %cst_37 = arith.constant dense<0.000000e+00> : vector<8x512xf32>
    %206 = tpu.matmul %204, %6, %cst_37 {dimension_numbers = #tpu.dot_dimension_numbers<[1], [0], [0], [1], [0, 0, 1, 1], [], []>} : vector<8x128xf32>, vector<128x512xf32>, vector<8x512xf32> -> vector<8x512xf32>
    %207 = arith.addf %205, %206 : vector<8x512xf32>
    %208 = vector.extract_strided_slice %207 {offsets = [0, 0], sizes = [8, 128], strides = [1, 1]} : vector<8x512xf32> to vector<8x128xf32>
    %209 = arith.negf %208 : vector<8x128xf32>
    %210 = math.exp %209 : vector<8x128xf32>
    %cst_38 = arith.constant 1.000000e+00 : f32
    %211 = vector.broadcast %cst_38 : f32 to vector<8x128xf32>
    %212 = arith.addf %211, %210 : vector<8x128xf32>
    %213 = arith.divf %211, %212 : vector<8x128xf32>
    %214 = vector.extract_strided_slice %207 {offsets = [0, 128], sizes = [8, 128], strides = [1, 1]} : vector<8x512xf32> to vector<8x128xf32>
    %215 = arith.negf %214 : vector<8x128xf32>
    %216 = math.exp %215 : vector<8x128xf32>
    %cst_39 = arith.constant 1.000000e+00 : f32
    %217 = vector.broadcast %cst_39 : f32 to vector<8x128xf32>
    %218 = arith.addf %217, %216 : vector<8x128xf32>
    %219 = arith.divf %217, %218 : vector<8x128xf32>
    %220 = vector.extract_strided_slice %207 {offsets = [0, 256], sizes = [8, 128], strides = [1, 1]} : vector<8x512xf32> to vector<8x128xf32>
    %221 = math.tanh %220 : vector<8x128xf32>
    %222 = vector.extract_strided_slice %207 {offsets = [0, 384], sizes = [8, 128], strides = [1, 1]} : vector<8x512xf32> to vector<8x128xf32>
    %223 = arith.negf %222 : vector<8x128xf32>
    %224 = math.exp %223 : vector<8x128xf32>
    %cst_40 = arith.constant 1.000000e+00 : f32
    %225 = vector.broadcast %cst_40 : f32 to vector<8x128xf32>
    %226 = arith.addf %225, %224 : vector<8x128xf32>
    %227 = arith.divf %225, %226 : vector<8x128xf32>
    %228 = arith.mulf %219, %202 : vector<8x128xf32>
    %229 = arith.mulf %213, %221 : vector<8x128xf32>
    %230 = arith.addf %228, %229 : vector<8x128xf32>
    %231 = math.tanh %230 : vector<8x128xf32>
    %232 = arith.mulf %227, %231 : vector<8x128xf32>
    %c0_41 = arith.constant 0 : index
    %c0_42 = arith.constant 0 : index
    %233 = vector.load %arg4[%c0_41, %c0_42] : memref<128x10xf32, #tpu.memory_space<vmem>>, vector<128x10xf32>
    %cst_43 = arith.constant dense<0.000000e+00> : vector<8x10xf32>
    %234 = tpu.matmul %232, %233, %cst_43 {dimension_numbers = #tpu.dot_dimension_numbers<[1], [0], [0], [1], [0, 0, 1, 1], [], []>} : vector<8x128xf32>, vector<128x10xf32>, vector<8x10xf32> -> vector<8x10xf32>
    %c0_44 = arith.constant 0 : index
    %c0_45 = arith.constant 0 : index
    %235 = vector.load %arg5[%c0_44, %c0_45] : memref<1x10xf32, #tpu.memory_space<vmem>>, vector<1x10xf32>
    %236 = vector.broadcast %235 : vector<1x10xf32> to vector<8x10xf32>
    %237 = arith.addf %234, %236 : vector<8x10xf32>
    %c0_46 = arith.constant 0 : index
    %c0_47 = arith.constant 0 : index
    %238 = vector.load %arg6[%c0_46, %c0_47] : memref<8x10xf32, #tpu.memory_space<vmem>>, vector<8x10xf32>
    tpu.vector_store %arg6[%c0_46, %c0_47], %237 {strides = array<i32>} : memref<8x10xf32, #tpu.memory_space<vmem>>, vector<8x10xf32>,
    return
  }
}

</mosaic_0001>

<bundles_post_ra>
// kernel: rnn_forward.1
= control target key start
LH: loop header
LB: loop body
LE: loop exit
PB: predicated region body
PF: predicated region fallthrough
CT: control target
= control target key end

     0   :  { %vm94_vm0 = vcmask 1043456   ;;  %v2705_v3 = vmov 0.0   ;;  %vm2706_vm1 = vmmov 1   ;;  %vm69_vm3 = vcmask 228352   ;;  %s3517_s1 = inlined_call_operand.vmem [shape: f32[28,512], index: 1, kind: input, shape index: {}]   ;;  %s3518_s2 = inlined_call_operand.vmem [shape: f32[128,512], index: 2, kind: input, shape index: {}]   ;;  %s3519_s0 = inlined_call_operand.vmem [shape: f32[64,28], index: 0, kind: input, shape index: {}]   ;;  %s3520_s3 = inlined_call_operand.vmem [shape: f32[1,512], index: 3, kind: input, shape index: {}]   ;;  %s3521_s4 = inlined_call_operand.vmem [shape: f32[128,10], index: 4, kind: input, shape index: {}]   ;;  %s3522_s5 = inlined_call_operand.vmem [shape: f32[1,10], index: 5, kind: input, shape index: {}]   ;;  %s3523_s6 = inlined_call_operand.vmem [shape: f32[8,10], index: 6, kind: output, shape index: {}]  }
   0x1   :  { %v32_v0 = vld [vmem:[%s3517_s1 + $0x8] sm:$0xff]  ;;  %v34_v2 = vld [vmem:[%s3517_s1 + $0x18] sm:$0xff]  ;;  %171 = vmatprep.mubr.f32.mxu0 %v2705_v3  ;;  %284 = vmatprep.mubr.f32.mxu1 %v2705_v3  ;;  %v31_v6 = vld [vmem:[%s3517_s1] sm:$0xff]  ;;  %vm2708_vm4 = vmmov 0   ;;  %vm1850_vm5 = vcmask 80896  }
   0x2   :  { %v36_v1 = vld [vmem:[%s3517_s1 + $0x28] sm:$0xff]  ;;  %v38_v5 = vld [vmem:[%s3517_s1 + $0x38] sm:$0xff]  ;;  %v35_v7 = vld [vmem:[%s3517_s1 + $0x20] sm:$0xff] }
   0x3   :  { %v1953_v4 = vpack.c.bf16 %v36_v1, %v32_v0  ;;  %v1963_v8 = vpack.c.bf16 %v38_v5, %v34_v2  ;;  %v1955_v9 = vpack.c.bf16 %v35_v7, %v31_v6  ;;  %v33_v10 = vld [vmem:[%s3517_s1 + $0x10] sm:$0xff]  ;;  %v40_v12 = vld [vmem:[%s3517_s1 + $0x48] sm:$0xff]  ;;  %vm2777_vm2 = vmpackc.low %vm94_vm0, %vm2706_vm1 }
   0x4   :  { %v37_v11 = vld [vmem:[%s3517_s1 + $0x30] sm:$0xff]  ;;  %v44_v14 = vld [vmem:[%s3517_s1 + $0x68] sm:$0xf]  ;;  %v42_v16 = vld [vmem:[%s3517_s1 + $0x58] sm:$0xff] }
   0x5   :  { %1954 = vmatprep.subr.bf16.mxu0 %v1953_v4  ;;  %v1965_v13 = vpack.c.bf16 %v37_v11, %v33_v10  ;;  %1964 = vmatprep.subr.bf16.mxu1 %v1963_v8  ;;  %v1957_v17 = vpack.c.bf16 %v44_v14, %v40_v12  ;;  %v46_v18 = vld [vmem:[%s3517_s1 + $0x78] sm:$0xf]  ;;  %v39_v19 = vld [vmem:[%s3517_s1 + $0x40] sm:$0xff]  ;;  %v41_v23 = vld [vmem:[%s3517_s1 + $0x50] sm:$0xff] }
   0x6   :  { %1956 = vmatpush1.bf16.msra.mxu0 %v1955_v9  ;;  %v43_v20 = vld [vmem:[%s3517_s1 + $0x60] sm:$0xf]  ;;  %v1967_v21 = vpack.c.bf16 %v46_v18, %v42_v16  ;;  %v45_v24 = vld [vmem:[%s3517_s1 + $0x70] sm:$0xf]  ;;  %v334_v26 = vld [vmem:[%s3518_s2 + $0x8] sm:$0xff] }
   0x7   :  { %1966 = vmatpush1.bf16.msra.mxu1 %v1965_v13  ;;  %v1960_v22 = vpack.c.bf16 %v43_v20, %v39_v19  ;;  %1959 = vmatprep.subr.msk.bf16.mxu0 %vm2777_vm2, %v1957_v17  ;;  %v1970_v25 = vpack.c.bf16 %v45_v24, %v41_v23  ;;  %v338_v27 = vld [vmem:[%s3518_s2 + $0x28] sm:$0xff]  ;;  %v336_v28 = vld [vmem:[%s3518_s2 + $0x18] sm:$0xff]  ;;  %v333_v31 = vld [vmem:[%s3518_s2] sm:$0xff] }
   0x8   :  { %1969 = vmatprep.subr.msk.bf16.mxu1 %vm2777_vm2, %v1967_v21  ;;  %v2812_v29 = vpack.c.bf16 %v338_v27, %v334_v26  ;;  %v340_v30 = vld [vmem:[%s3518_s2 + $0x38] sm:$0xff]  ;;  %v337_v32 = vld [vmem:[%s3518_s2 + $0x20] sm:$0xff]  ;;  %v335_v36 = vld [vmem:[%s3518_s2 + $0x10] sm:$0xff] }
   0x9   :  { %v23_v33 = vld [vmem:[%s3519_s0] sm:$0xff]  ;;  %v2828_v34 = vpack.c.bf16 %v340_v30, %v336_v28  ;;  %v2830_v35 = vpack.c.bf16 %v337_v32, %v333_v31  ;;  %v339_v37 = vld [vmem:[%s3518_s2 + $0x30] sm:$0xff]  ;;  %v342_v39 = vld [vmem:[%s3518_s2 + $0x48] sm:$0xff] }
   0xa   :  { %1962 = vmatpush1.bf16.msk.msra.mxu0 %vm2777_vm2, %v1960_v22  ;;  %v2841_v38 = vpack.c.bf16 %v339_v37, %v335_v36  ;;  %v346_v40 = vld [vmem:[%s3518_s2 + $0x68] sm:$0xff]  ;;  %v344_v41 = vld [vmem:[%s3518_s2 + $0x58] sm:$0xff]  ;;  %v341_v44 = vld [vmem:[%s3518_s2 + $0x40] sm:$0xff] }
   0xb   :  { %1972 = vmatpush1.bf16.msk.msra.mxu1 %vm2777_vm2, %v1970_v25  ;;  %1974 = vmatprep.subr.bf16.mxu0 %v2812_v29  ;;  %v2853_v42 = vpack.c.bf16 %v346_v40, %v342_v39  ;;  %v348_v43 = vld [vmem:[%s3518_s2 + $0x78] sm:$0xff]  ;;  %v345_v45 = vld [vmem:[%s3518_s2 + $0x60] sm:$0xff]  ;;  %v24_v46 = vld [vmem:[%s3519_s0 + $0x8] sm:$0xff] }
   0xc   :  { %2006 = vmatprep.subr.bf16.mxu1 %v2828_v34  ;;  %v2868_v47 = vpack.c.bf16 %v348_v43, %v344_v41  ;;  %v343_v48 = vld [vmem:[%s3518_s2 + $0x50] sm:$0xff]  ;;  %v2878_v50 = vpack.c.bf16 %v345_v45, %v341_v44  ;;  %v350_v51 = vld [vmem:[%s3518_s2 + $0x88] sm:$0xff]  ;;  %v352_v53 = vld [vmem:[%s3518_s2 + $0x98] sm:$0xff] }
   0xd   :  { %1858 = vmatmul.mubr.msk.f32.vlgmr.msra.gmra.mrb[0].mxu0 %vm69_vm3, %v23_v33  ;;  %v347_v49 = vld [vmem:[%s3518_s2 + $0x70] sm:$0xff]  ;;  %v354_v52 = vld [vmem:[%s3518_s2 + $0xa8] sm:$0xff]  ;;  %v356_v55 = vld [vmem:[%s3518_s2 + $0xb8] sm:$0xff] }
   0xe   :  { %1868 = vmatmul.mubr.msk.f32.vlgmr.msra.gmra.mrb[0].mxu1 %vm69_vm3, %v23_v33  ;;  %1976 = vmatpush1.bf16.msra.mxu0 %v2830_v35  ;;  %v2891_v54 = vpack.c.bf16 %v347_v49, %v343_v48  ;;  %v349_v56 = vld [vmem:[%s3518_s2 + $0x80] sm:$0xff]  ;;  %v2904_v58 = vpack.c.bf16 %v354_v52, %v350_v51  ;;  %v351_v59 = vld [vmem:[%s3518_s2 + $0x90] sm:$0xff]  ;;  %v2914_v61 = vpack.c.bf16 %v356_v55, %v352_v53  ;;  %v358_v62 = vld [vmem:[%s3518_s2 + $0xc8] sm:$0xff] }
   0xf   :  { %2008 = vmatpush1.bf16.msra.mxu1 %v2841_v38  ;;  %177 = vmatprep.mubr.f32.mxu0 %v2705_v3  ;;  %v353_v57 = vld [vmem:[%s3518_s2 + $0xa0] sm:$0xff]  ;;  %v355_v60 = vld [vmem:[%s3518_s2 + $0xb0] sm:$0xff]  ;;  %v362_v63 = vld [vmem:[%s3518_s2 + $0xe8] sm:$0xff] }
  0x10   :  { %290 = vmatprep.mubr.f32.mxu1 %v2705_v3  ;;  %1978 = vmatprep.subr.bf16.mxu0 %v2853_v42  ;;  %v25_v0 = vld [vmem:[%s3519_s0 + $0x10] sm:$0xff]  ;;  %v2927_v1 = vpack.c.bf16 %v353_v57, %v349_v56  ;;  %v360_v2 = vld [vmem:[%s3518_s2 + $0xd8] sm:$0xff]  ;;  %v2937_v5 = vpack.c.bf16 %v355_v60, %v351_v59  ;;  %v357_v6 = vld [vmem:[%s3518_s2 + $0xc0] sm:$0xff]  ;;  %v2947_v8 = vpack.c.bf16 %v362_v63, %v358_v62 }
  0x11   :  { %1859 = vmatmul.mubr.msk.f32.gmra.mrb[2].mxu0 %vm69_vm3, %v24_v46  ;;  %2010 = vmatprep.subr.bf16.mxu1 %v2868_v47  ;;  %v364_v4 = vld [vmem:[%s3518_s2 + $0xf8] sm:$0xff]  ;;  %v361_v7 = vld [vmem:[%s3518_s2 + $0xe0] sm:$0xff]  ;;  %v359_v9 = vld [vmem:[%s3518_s2 + $0xd0] sm:$0xff] }
  0x12   :  { %1869 = vmatmul.mubr.msk.f32.gmra.mrb[2].mxu1 %vm69_vm3, %v24_v46  ;;  %1980 = vmatpush1.bf16.msra.mxu0 %v2878_v50  ;;  %v363_v10 = vld [vmem:[%s3518_s2 + $0xf0] sm:$0xff]  ;;  %v2957_v11 = vpack.c.bf16 %v364_v4, %v360_v2  ;;  %v366_v12 = vld [vmem:[%s3518_s2 + $0x108] sm:$0xff]  ;;  %v26_v14 = vld [vmem:[%s3519_s0 + $0x18] sm:$0xff]  ;;  %v2970_v15 = vpack.c.bf16 %v361_v7, %v357_v6 }
  0x13   :  { %2012 = vmatpush1.bf16.msra.mxu1 %v2891_v54  ;;  %183 = vmatprep.mubr.f32.mxu0 %v2705_v3  ;;  %v370_v13 = vld [vmem:[%s3518_s2 + $0x128] sm:$0xff]  ;;  %v368_v16 = vld [vmem:[%s3518_s2 + $0x118] sm:$0xff]  ;;  %v2980_v18 = vpack.c.bf16 %v363_v10, %v359_v9  ;;  %v365_v19 = vld [vmem:[%s3518_s2 + $0x100] sm:$0xff] }
  0x14   :  { %296 = vmatprep.mubr.f32.mxu1 %v2705_v3  ;;  %1982 = vmatprep.subr.bf16.mxu0 %v2904_v58  ;;  %v372_v17 = vld [vmem:[%s3518_s2 + $0x138] sm:$0xff]  ;;  %v369_v20 = vld [vmem:[%s3518_s2 + $0x120] sm:$0xff]  ;;  %v2990_v21 = vpack.c.bf16 %v370_v13, %v366_v12  ;;  %v367_v22 = vld [vmem:[%s3518_s2 + $0x110] sm:$0xff] }
  0x15   :  { %1860 = vmatmul.mubr.msk.f32.gmra.mrb[4].mxu0 %vm69_vm3, %v25_v0  ;;  %2014 = vmatprep.subr.bf16.mxu1 %v2914_v61  ;;  %v371_v23 = vld [vmem:[%s3518_s2 + $0x130] sm:$0xff]  ;;  %v3000_v24 = vpack.c.bf16 %v372_v17, %v368_v16  ;;  %v374_v25 = vld [vmem:[%s3518_s2 + $0x148] sm:$0xff]  ;;  %v27_v27 = vld [vmem:[%s3519_s0 + $0x20] sm:$0xff]  ;;  %v3013_v28 = vpack.c.bf16 %v369_v20, %v365_v19  ;;  %v49_v20 = vlaneseq }
  0x16   :  { %1870 = vmatmul.mubr.msk.f32.gmra.mrb[4].mxu1 %vm69_vm3, %v25_v0  ;;  %1984 = vmatpush1.bf16.msra.mxu0 %v2927_v1  ;;  %v378_v26 = vld [vmem:[%s3518_s2 + $0x168] sm:$0xff]  ;;  %v376_v30 = vld [vmem:[%s3518_s2 + $0x158] sm:$0xff]  ;;  %v3023_v32 = vpack.c.bf16 %v371_v23, %v367_v22  ;;  %v373_v33 = vld [vmem:[%s3518_s2 + $0x140] sm:$0xff] }
  0x17   :  { %2016 = vmatpush1.bf16.msra.mxu1 %v2937_v5  ;;  %189 = vmatprep.mubr.f32.mxu0 %v2705_v3  ;;  %v380_v31 = vld [vmem:[%s3518_s2 + $0x178] sm:$0xff]  ;;  %v377_v36 = vld [vmem:[%s3518_s2 + $0x160] sm:$0xff]  ;;  %v3033_v37 = vpack.c.bf16 %v378_v26, %v374_v25  ;;  %v375_v39 = vld [vmem:[%s3518_s2 + $0x150] sm:$0xff]  ;;  %v50_v22 = vshrl.u32 %v49_v20, 7 }
  0x18   :  { %302 = vmatprep.mubr.f32.mxu1 %v2705_v3  ;;  %1986 = vmatprep.subr.bf16.mxu0 %v2947_v8  ;;  %v379_v40 = vld [vmem:[%s3518_s2 + $0x170] sm:$0xff]  ;;  %v3043_v41 = vpack.c.bf16 %v380_v31, %v376_v30  ;;  %v382_v43 = vld [vmem:[%s3518_s2 + $0x188] sm:$0xff]  ;;  %v3056_v46 = vpack.c.bf16 %v377_v36, %v373_v33  ;;  %v384_v48 = vld [vmem:[%s3518_s2 + $0x198] sm:$0xff] }
  0x19   :  { %1861 = vmatmul.mubr.msk.f32.gmra.mrb[6].mxu0 %vm69_vm3, %v26_v14  ;;  %2018 = vmatprep.subr.bf16.mxu1 %v2957_v11  ;;  %v386_v44 = vld [vmem:[%s3518_s2 + $0x1a8] sm:$0xff]  ;;  %v388_v49 = vld [vmem:[%s3518_s2 + $0x1b8] sm:$0xff]  ;;  %v3066_v51 = vpack.c.bf16 %v379_v40, %v375_v39  ;;  %v381_v52 = vld [vmem:[%s3518_s2 + $0x180] sm:$0xff]  ;;  %v51_v23 = vsub.s32 0, %v50_v22  ;;  %v55_v26 = vsub.s32 1, %v50_v22  ;;  %v63_v33 = vsub.s32 3, %v50_v22 }
  0x1a   :  { %1871 = vmatmul.mubr.msk.f32.gmra.mrb[6].mxu1 %vm69_vm3, %v26_v14  ;;  %1988 = vmatpush1.bf16.msra.mxu0 %v2970_v15  ;;  %v28_v45 = vld [vmem:[%s3519_s0 + $0x28] sm:$0xff]  ;;  %v385_v53 = vld [vmem:[%s3518_s2 + $0x1a0] sm:$0xff]  ;;  %v3076_v55 = vpack.c.bf16 %v386_v44, %v382_v43  ;;  %v383_v56 = vld [vmem:[%s3518_s2 + $0x190] sm:$0xff]  ;;  %v3086_v59 = vpack.c.bf16 %v388_v49, %v384_v48 }
  0x1b   :  { %2020 = vmatpush1.bf16.msra.mxu1 %v2980_v18  ;;  %195 = vmatprep.mubr.f32.mxu0 %v2705_v3  ;;  %v387_v57 = vld [vmem:[%s3518_s2 + $0x1b0] sm:$0xff]  ;;  %v390_v60 = vld [vmem:[%s3518_s2 + $0x1c8] sm:$0xff]  ;;  %v3099_v0 = vpack.c.bf16 %v385_v53, %v381_v52  ;;  %v392_v2 = vld [vmem:[%s3518_s2 + $0x1d8] sm:$0xff]  ;;  %v59_v52 = vsub.s32 2, %v50_v22 }
  0x1c   :  { %308 = vmatprep.mubr.f32.mxu1 %v2705_v3  ;;  %1990 = vmatprep.subr.bf16.mxu0 %v2990_v21  ;;  %v394_v62 = vld [vmem:[%s3518_s2 + $0x1e8] sm:$0xff]  ;;  %v29_v63 = vld [vmem:[%s3519_s0 + $0x30] sm:$0xff]  ;;  %v396_v4 = vld [vmem:[%s3518_s2 + $0x1f8] sm:$0xff]  ;;  %v3109_v6 = vpack.c.bf16 %v387_v57, %v383_v56 }
  0x1d   :  { %1862 = vmatmul.mubr.msk.f32.gmra.mrb[8].mxu0 %vm69_vm3, %v27_v27  ;;  %2022 = vmatprep.subr.bf16.mxu1 %v3000_v24  ;;  %v389_v7 = vld [vmem:[%s3518_s2 + $0x1c0] sm:$0xff]  ;;  %v3119_v10 = vpack.c.bf16 %v394_v62, %v390_v60  ;;  %v391_v12 = vld [vmem:[%s3518_s2 + $0x1d0] sm:$0xff]  ;;  %v3129_v14 = vpack.c.bf16 %v396_v4, %v392_v2  ;;  %v30_v16 = vld [vmem:[%s3519_s0 + $0x38] sm:$0xff] }
  0x1e   :  { %1872 = vmatmul.mubr.msk.f32.gmra.mrb[8].mxu1 %vm69_vm3, %v27_v27  ;;  %1992 = vmatpush1.bf16.msra.mxu0 %v3013_v28  ;;  %v393_v9 = vld [vmem:[%s3518_s2 + $0x1e0] sm:$0xff]  ;;  %v395_v13 = vld [vmem:[%s3518_s2 + $0x1f0] sm:$0xff] }
  0x1f   :  { %2024 = vmatpush1.bf16.msra.mxu1 %v3023_v32  ;;  %201 = vmatprep.mubr.f32.mxu0 %v2705_v3  ;;  %v3136_v17 = vpack.c.bf16 %v393_v9, %v389_v7  ;;  %v3140_v19 = vpack.c.bf16 %v395_v13, %v391_v12  ;;  %v47_v25 = vld [vmem:[%s3520_s3] sm:$0xf] }
  0x20   :  { %314 = vmatprep.mubr.f32.mxu1 %v2705_v3  ;;  %1994 = vmatprep.subr.bf16.mxu0 %v3033_v37  ;;  %v3192_v27 = vrot.slane %v47_v25, %v51_v23  ;;  %v3194_v30 = vrot.slane %v47_v25, %v55_v26  ;;  %v3198_v49 = vrot.slane %v47_v25, %v63_v33 }
  0x21   :  { %1863 = vmatmul.mubr.msk.f32.gmra.mrb[10].mxu0 %vm69_vm3, %v28_v45  ;;  %2026 = vmatprep.subr.bf16.mxu1 %v3043_v41  ;;  %v3201_v56 = vrot.slane %v47_v25, %v59_v52 }
  0x22   :  { %1873 = vmatmul.mubr.msk.f32.gmra.mrb[10].mxu1 %vm69_vm3, %v28_v45  ;;  %1996 = vmatpush1.bf16.msra.mxu0 %v3056_v46 }
  0x23   :  { %2028 = vmatpush1.bf16.msra.mxu1 %v3066_v51  ;;  %207 = vmatprep.mubr.f32.mxu0 %v2705_v3 }
  0x24   :  { %320 = vmatprep.mubr.f32.mxu1 %v2705_v3  ;;  %1998 = vmatprep.subr.bf16.mxu0 %v3076_v55 }
  0x25   :  { %1864 = vmatmul.mubr.msk.f32.gmra.mrb[12].mxu0 %vm69_vm3, %v29_v63  ;;  %2030 = vmatprep.subr.bf16.mxu1 %v3086_v59 }
  0x26   :  { %1874 = vmatmul.mubr.msk.f32.gmra.mrb[12].mxu1 %vm69_vm3, %v29_v63  ;;  %2000 = vmatpush1.bf16.msra.mxu0 %v3099_v0 }
  0x27   :  { %2032 = vmatpush1.bf16.msra.mxu1 %v3109_v6  ;;  %213 = vmatprep.mubr.f32.mxu0 %v2705_v3 }
  0x28   :  { %326 = vmatprep.mubr.f32.mxu1 %v2705_v3  ;;  %2002 = vmatprep.subr.bf16.mxu0 %v3119_v10 }
  0x29   :  { %1865 = vmatmul.mubr.msk.f32.gmra.mrb[14].mxu0 %vm69_vm3, %v30_v16  ;;  %2034 = vmatprep.subr.bf16.mxu1 %v3129_v14 }
  0x2a   :  { %1875 = vmatmul.mubr.msk.f32.gmra.mrb[14].mxu1 %vm69_vm3, %v30_v16  ;;  %2004 = vmatpush1.bf16.msra.mxu0 %v3136_v17 }
  0x2b   :  { %2036 = vmatpush1.bf16.msra.mxu1 %v3140_v19  ;;  %461 = vmatprep.mubr.f32.mxu0 %v2705_v3 }
  0x2c   :  { %532 = vmatprep.mubr.f32.mxu1 %v2705_v3  ;;  %2038 = vmatprep.subr.bf16.mxu0 %v2812_v29 }
  0x2d   :  { %462 = vmatmul.mubr.f32.vlgmr.msra.gmra.mrb[0].mxu0 %v2705_v3  ;;  %2070 = vmatprep.subr.bf16.mxu1 %v2828_v34 }
  0x2e   :  { %533 = vmatmul.mubr.f32.vlgmr.msra.gmra.mrb[0].mxu1 %v2705_v3  ;;  %2040 = vmatpush1.bf16.msra.mxu0 %v2830_v35 }
  0x2f   :  { %2072 = vmatpush1.bf16.msra.mxu1 %v2841_v38  ;;  %2042 = vmatprep.subr.bf16.mxu0 %v2853_v42 }
  0x30   :  { %2074 = vmatprep.subr.bf16.mxu1 %v2868_v47  ;;  %631 = vmatprep.mubr.f32.mxu0 %v2705_v3 }
  0x31   :  { %702 = vmatprep.mubr.f32.mxu1 %v2705_v3 }
  0x32   :  { %2044 = vmatpush1.bf16.msra.mxu0 %v2878_v50 }
  0x33   :  { %2076 = vmatpush1.bf16.msra.mxu1 %v2891_v54  ;;  %2046 = vmatprep.subr.bf16.mxu0 %v2904_v58 }
  0x34   :  { %2078 = vmatprep.subr.bf16.mxu1 %v2914_v61 }
  0x36   :  { %2048 = vmatpush1.bf16.msra.mxu0 %v2927_v1 }
  0x37   :  { %2080 = vmatpush1.bf16.msra.mxu1 %v2937_v5  ;;  %2050 = vmatprep.subr.bf16.mxu0 %v2947_v8 }
  0x38   :  { %2082 = vmatprep.subr.bf16.mxu1 %v2957_v11 }
  0x3a   :  { %2052 = vmatpush1.bf16.msra.mxu0 %v2970_v15 }
  0x3b   :  { %2084 = vmatpush1.bf16.msra.mxu1 %v2980_v18  ;;  %2054 = vmatprep.subr.bf16.mxu0 %v2990_v21 }
  0x3c   :  { %2086 = vmatprep.subr.bf16.mxu1 %v3000_v24 }
  0x3e   :  { %2056 = vmatpush1.bf16.msra.mxu0 %v3013_v28 }
  0x3f   :  { %2088 = vmatpush1.bf16.msra.mxu1 %v3023_v32  ;;  %2058 = vmatprep.subr.bf16.mxu0 %v3033_v37 }
  0x40   :  { %2090 = vmatprep.subr.bf16.mxu1 %v3043_v41 }
  0x42   :  { %2060 = vmatpush1.bf16.msra.mxu0 %v3056_v46 }
  0x43   :  { %2092 = vmatpush1.bf16.msra.mxu1 %v3066_v51  ;;  %2062 = vmatprep.subr.bf16.mxu0 %v3076_v55 }
  0x44   :  { %2094 = vmatprep.subr.bf16.mxu1 %v3086_v59 }
  0x46   :  { %2064 = vmatpush1.bf16.msra.mxu0 %v3099_v0 }
  0x47   :  { %2096 = vmatpush1.bf16.msra.mxu1 %v3109_v6  ;;  %2066 = vmatprep.subr.bf16.mxu0 %v3119_v10 }
  0x48   :  { %2098 = vmatprep.subr.bf16.mxu1 %v3129_v14 }
  0x4a   :  { %2068 = vmatpush1.bf16.msra.mxu0 %v3136_v17 }
  0x4b   :  { %2100 = vmatpush1.bf16.msra.mxu1 %v3140_v19  ;;  %2102 = vmatprep.subr.bf16.mxu0 %v2812_v29 }
  0x4c   :  { %2134 = vmatprep.subr.bf16.mxu1 %v2828_v34 }
 0x100   :  { %v463_v31 = vpop.f32.mrb[0].mxu0 }
 0x101   :  { %v2509_v36 = vadd.f32 %v463_v31, %v3192_v27  ;;  %v534_v39 = vpop.f32.mrb[0].mxu1  ;;  %v465_v40 = vpop.f32.mrb[1].mxu0 }
 0x102   :  { %v2510_v43 = vadd.f32 %v465_v40, %v3194_v30  ;;  %v536_v44 = vpop.f32.mrb[1].mxu1  ;;  %v2525_v60 = vadd.f32 %v534_v39, %v3201_v56 }
 0x103   :  { %v1876_v45 = vmul.f32 -1.442695, %v2509_v36  ;;  %v2526_v53 = vadd.f32 %v536_v44, %v3198_v49 }
 0x104   :  { %v1877_v48 = vmul.f32 -1.442695, %v2510_v43 }
 0x105   :  { %2577 = vpow2.f32 %v1876_v45  ;;  %v1878_v57 = vmul.f32 -1.442695, %v2526_v53 }
 0x106   :  { %2579 = vpow2.f32 %v1877_v48 }
 0x107   :  { %2581 = vpow2.f32 %v1878_v57 }
 0x108   :  { %2583 = vtanh.f32 %v2525_v60 }
 0x10f   :  { %v2578_v62 = vpop.eup %2577 }
 0x110   :  { %v2580_v63 = vpop.eup %2579  ;;  %v546_v2 = vadd.f32 1.0, %v2578_v62 }
 0x111   :  { %v552_v4 = vadd.f32 1.0, %v2580_v63  ;;  %v2582_v7 = vpop.eup %2581 }
 0x112   :  { %2585 = vrcp.f32 %v546_v2  ;;  %v2584_v9 = vpop.eup %2583  ;;  %v559_v20 = vadd.f32 1.0, %v2582_v7 }
 0x113   :  { %2587 = vrcp.f32 %v552_v4 }
 0x114   :  { %2589 = vrcp.f32 %v559_v20 }
 0x11c   :  { %v2586_v12 = vpop.eup %2585 }
 0x11d   :  { %v2588_v13 = vpop.eup %2587  ;;  %v563_v16 = vmul.f32 %v2586_v12, %v2584_v9 }
 0x11e   :  { %v562_v22 = vmul.f32 0.0, %v2588_v13  ;;  %v2590_v25 = vpop.eup %2589 }
 0x120   :  { %v3204_v23 = vadd.f32 %v563_v16, %v562_v22 }
 0x122   :  { %2591 = vtanh.f32 %v3204_v23 }
 0x12c   :  { %v2592_v26 = vpop.eup %2591 }
 0x12d   :  { %v566_v31 = vmul.f32 %v2592_v26, %v2590_v25 }
 0x12f   :  { %632 = vmatmul.mubr.f32.vlgmr.msra.gmra.mrb[2].mxu0 %v566_v31  ;;  %703 = vmatmul.mubr.f32.vlgmr.msra.gmra.mrb[2].mxu1 %v566_v31 }
 0x130   :  { %2104 = vmatpush1.bf16.msra.mxu0 %v2830_v35  ;;  %2136 = vmatpush1.bf16.msra.mxu1 %v2841_v38 }
 0x131   :  { %2106 = vmatprep.subr.bf16.mxu0 %v2853_v42  ;;  %2138 = vmatprep.subr.bf16.mxu1 %v2868_v47 }
 0x132   :  { %801 = vmatprep.mubr.f32.mxu0 %v2705_v3  ;;  %872 = vmatprep.mubr.f32.mxu1 %v2705_v3 }
 0x134   :  { %2108 = vmatpush1.bf16.msra.mxu0 %v2878_v50  ;;  %2140 = vmatpush1.bf16.msra.mxu1 %v2891_v54 }
 0x135   :  { %2110 = vmatprep.subr.bf16.mxu0 %v2904_v58  ;;  %2142 = vmatprep.subr.bf16.mxu1 %v2914_v61 }
 0x138   :  { %2112 = vmatpush1.bf16.msra.mxu0 %v2927_v1  ;;  %2144 = vmatpush1.bf16.msra.mxu1 %v2937_v5 }
 0x139   :  { %2114 = vmatprep.subr.bf16.mxu0 %v2947_v8  ;;  %2146 = vmatprep.subr.bf16.mxu1 %v2957_v11 }
 0x13c   :  { %2116 = vmatpush1.bf16.msra.mxu0 %v2970_v15  ;;  %2148 = vmatpush1.bf16.msra.mxu1 %v2980_v18 }
 0x13d   :  { %2118 = vmatprep.subr.bf16.mxu0 %v2990_v21  ;;  %2150 = vmatprep.subr.bf16.mxu1 %v3000_v24 }
 0x140   :  { %2120 = vmatpush1.bf16.msra.mxu0 %v3013_v28  ;;  %2152 = vmatpush1.bf16.msra.mxu1 %v3023_v32 }
 0x141   :  { %2122 = vmatprep.subr.bf16.mxu0 %v3033_v37  ;;  %2154 = vmatprep.subr.bf16.mxu1 %v3043_v41 }
 0x144   :  { %2124 = vmatpush1.bf16.msra.mxu0 %v3056_v46  ;;  %2156 = vmatpush1.bf16.msra.mxu1 %v3066_v51 }
 0x145   :  { %2126 = vmatprep.subr.bf16.mxu0 %v3076_v55  ;;  %2158 = vmatprep.subr.bf16.mxu1 %v3086_v59 }
 0x148   :  { %2128 = vmatpush1.bf16.msra.mxu0 %v3099_v0  ;;  %2160 = vmatpush1.bf16.msra.mxu1 %v3109_v6 }
 0x149   :  { %2130 = vmatprep.subr.bf16.mxu0 %v3119_v10  ;;  %2162 = vmatprep.subr.bf16.mxu1 %v3129_v14 }
 0x14c   :  { %2132 = vmatpush1.bf16.msra.mxu0 %v3136_v17  ;;  %2164 = vmatpush1.bf16.msra.mxu1 %v3140_v19 }
 0x14d   :  { %2166 = vmatprep.subr.bf16.mxu0 %v2812_v29  ;;  %2198 = vmatprep.subr.bf16.mxu1 %v2828_v34 }
 0x202   :  { %v633_v33 = vpop.f32.mrb[2].mxu0  ;;  %v704_v36 = vpop.f32.mrb[2].mxu1 }
 0x203   :  { %v2511_v39 = vadd.f32 %v633_v33, %v3192_v27  ;;  %v635_v40 = vpop.f32.mrb[3].mxu0  ;;  %v706_v43 = vpop.f32.mrb[3].mxu1  ;;  %v2527_v57 = vadd.f32 %v704_v36, %v3201_v56 }
 0x204   :  { %v2512_v44 = vadd.f32 %v635_v40, %v3194_v30  ;;  %v2528_v52 = vadd.f32 %v706_v43, %v3198_v49 }
 0x205   :  { %v1879_v45 = vmul.f32 -1.442695, %v2511_v39 }
 0x206   :  { %v1880_v48 = vmul.f32 -1.442695, %v2512_v44  ;;  %v1881_v53 = vmul.f32 -1.442695, %v2528_v52 }
 0x207   :  { %2593 = vpow2.f32 %v1879_v45 }
 0x208   :  { %2595 = vpow2.f32 %v1880_v48 }
 0x209   :  { %2597 = vpow2.f32 %v1881_v53 }
 0x20a   :  { %2599 = vtanh.f32 %v2527_v57 }
 0x211   :  { %v2594_v60 = vpop.eup %2593 }
 0x212   :  { %v2596_v62 = vpop.eup %2595  ;;  %v716_v63 = vadd.f32 1.0, %v2594_v60 }
 0x213   :  { %v722_v2 = vadd.f32 1.0, %v2596_v62  ;;  %v2598_v4 = vpop.eup %2597 }
 0x214   :  { %2601 = vrcp.f32 %v716_v63  ;;  %v2600_v7 = vpop.eup %2599  ;;  %v729_v16 = vadd.f32 1.0, %v2598_v4 }
 0x215   :  { %2603 = vrcp.f32 %v722_v2 }
 0x216   :  { %2605 = vrcp.f32 %v729_v16 }
 0x21e   :  { %v2602_v9 = vpop.eup %2601 }
 0x21f   :  { %v2604_v12 = vpop.eup %2603  ;;  %v733_v13 = vmul.f32 %v2602_v9, %v2600_v7 }
 0x220   :  { %v732_v20 = vmul.f32 %v2604_v12, %v3204_v23  ;;  %v2606_v25 = vpop.eup %2605 }
 0x222   :  { %v3246_v22 = vadd.f32 %v733_v13, %v732_v20 }
 0x224   :  { %2607 = vtanh.f32 %v3246_v22 }
 0x22e   :  { %v2608_v26 = vpop.eup %2607 }
 0x22f   :  { %v736_v31 = vmul.f32 %v2608_v26, %v2606_v25 }
 0x231   :  { %802 = vmatmul.mubr.f32.vlgmr.msra.gmra.mrb[4].mxu0 %v736_v31  ;;  %873 = vmatmul.mubr.f32.vlgmr.msra.gmra.mrb[4].mxu1 %v736_v31 }
 0x232   :  { %2168 = vmatpush1.bf16.msra.mxu0 %v2830_v35  ;;  %2200 = vmatpush1.bf16.msra.mxu1 %v2841_v38 }
 0x233   :  { %2170 = vmatprep.subr.bf16.mxu0 %v2853_v42  ;;  %2202 = vmatprep.subr.bf16.mxu1 %v2868_v47 }
 0x234   :  { %971 = vmatprep.mubr.f32.mxu0 %v2705_v3  ;;  %1042 = vmatprep.mubr.f32.mxu1 %v2705_v3 }
 0x236   :  { %2172 = vmatpush1.bf16.msra.mxu0 %v2878_v50  ;;  %2204 = vmatpush1.bf16.msra.mxu1 %v2891_v54 }
 0x237   :  { %2174 = vmatprep.subr.bf16.mxu0 %v2904_v58  ;;  %2206 = vmatprep.subr.bf16.mxu1 %v2914_v61 }
 0x23a   :  { %2176 = vmatpush1.bf16.msra.mxu0 %v2927_v1  ;;  %2208 = vmatpush1.bf16.msra.mxu1 %v2937_v5 }
 0x23b   :  { %2178 = vmatprep.subr.bf16.mxu0 %v2947_v8  ;;  %2210 = vmatprep.subr.bf16.mxu1 %v2957_v11 }
 0x23e   :  { %2180 = vmatpush1.bf16.msra.mxu0 %v2970_v15  ;;  %2212 = vmatpush1.bf16.msra.mxu1 %v2980_v18 }
 0x23f   :  { %2182 = vmatprep.subr.bf16.mxu0 %v2990_v21  ;;  %2214 = vmatprep.subr.bf16.mxu1 %v3000_v24 }
 0x242   :  { %2184 = vmatpush1.bf16.msra.mxu0 %v3013_v28  ;;  %2216 = vmatpush1.bf16.msra.mxu1 %v3023_v32 }
 0x243   :  { %2186 = vmatprep.subr.bf16.mxu0 %v3033_v37  ;;  %2218 = vmatprep.subr.bf16.mxu1 %v3043_v41 }
 0x246   :  { %2188 = vmatpush1.bf16.msra.mxu0 %v3056_v46  ;;  %2220 = vmatpush1.bf16.msra.mxu1 %v3066_v51 }
 0x247   :  { %2190 = vmatprep.subr.bf16.mxu0 %v3076_v55  ;;  %2222 = vmatprep.subr.bf16.mxu1 %v3086_v59 }
 0x24a   :  { %2192 = vmatpush1.bf16.msra.mxu0 %v3099_v0  ;;  %2224 = vmatpush1.bf16.msra.mxu1 %v3109_v6 }
 0x24b   :  { %2194 = vmatprep.subr.bf16.mxu0 %v3119_v10  ;;  %2226 = vmatprep.subr.bf16.mxu1 %v3129_v14 }
 0x24e   :  { %2196 = vmatpush1.bf16.msra.mxu0 %v3136_v17  ;;  %2228 = vmatpush1.bf16.msra.mxu1 %v3140_v19 }
 0x24f   :  { %2230 = vmatprep.subr.bf16.mxu0 %v2812_v29  ;;  %2262 = vmatprep.subr.bf16.mxu1 %v2828_v34 }
 0x304   :  { %v803_v23 = vpop.f32.mrb[4].mxu0  ;;  %v874_v33 = vpop.f32.mrb[4].mxu1 }
 0x305   :  { %v2513_v36 = vadd.f32 %v803_v23, %v3192_v27  ;;  %v805_v39 = vpop.f32.mrb[5].mxu0  ;;  %v876_v40 = vpop.f32.mrb[5].mxu1  ;;  %v2529_v53 = vadd.f32 %v874_v33, %v3201_v56 }
 0x306   :  { %v2514_v43 = vadd.f32 %v805_v39, %v3194_v30  ;;  %v2530_v48 = vadd.f32 %v876_v40, %v3198_v49 }
 0x307   :  { %v1882_v44 = vmul.f32 -1.442695, %v2513_v36 }
 0x308   :  { %v1883_v45 = vmul.f32 -1.442695, %v2514_v43  ;;  %v1884_v52 = vmul.f32 -1.442695, %v2530_v48 }
 0x309   :  { %2609 = vpow2.f32 %v1882_v44 }
 0x30a   :  { %2611 = vpow2.f32 %v1883_v45 }
 0x30b   :  { %2613 = vpow2.f32 %v1884_v52 }
 0x30c   :  { %2615 = vtanh.f32 %v2529_v53 }
 0x313   :  { %v2610_v57 = vpop.eup %2609 }
 0x314   :  { %v2612_v60 = vpop.eup %2611  ;;  %v886_v62 = vadd.f32 1.0, %v2610_v57 }
 0x315   :  { %v892_v63 = vadd.f32 1.0, %v2612_v60  ;;  %v2614_v2 = vpop.eup %2613 }
 0x316   :  { %2617 = vrcp.f32 %v886_v62  ;;  %v2616_v4 = vpop.eup %2615  ;;  %v899_v13 = vadd.f32 1.0, %v2614_v2 }
 0x317   :  { %2619 = vrcp.f32 %v892_v63 }
 0x318   :  { %2621 = vrcp.f32 %v899_v13 }
 0x320   :  { %v2618_v7 = vpop.eup %2617 }
 0x321   :  { %v2620_v9 = vpop.eup %2619  ;;  %v903_v12 = vmul.f32 %v2618_v7, %v2616_v4 }
 0x322   :  { %v902_v16 = vmul.f32 %v2620_v9, %v3246_v22  ;;  %v2622_v25 = vpop.eup %2621 }
 0x324   :  { %v3288_v20 = vadd.f32 %v903_v12, %v902_v16 }
 0x326   :  { %2623 = vtanh.f32 %v3288_v20 }
 0x330   :  { %v2624_v26 = vpop.eup %2623 }
 0x331   :  { %v906_v31 = vmul.f32 %v2624_v26, %v2622_v25 }
 0x333   :  { %972 = vmatmul.mubr.f32.vlgmr.msra.gmra.mrb[6].mxu0 %v906_v31  ;;  %1043 = vmatmul.mubr.f32.vlgmr.msra.gmra.mrb[6].mxu1 %v906_v31 }
 0x334   :  { %2232 = vmatpush1.bf16.msra.mxu0 %v2830_v35  ;;  %2264 = vmatpush1.bf16.msra.mxu1 %v2841_v38 }
 0x335   :  { %2234 = vmatprep.subr.bf16.mxu0 %v2853_v42  ;;  %2266 = vmatprep.subr.bf16.mxu1 %v2868_v47 }
 0x336   :  { %1141 = vmatprep.mubr.f32.mxu0 %v2705_v3  ;;  %1212 = vmatprep.mubr.f32.mxu1 %v2705_v3 }
 0x338   :  { %2236 = vmatpush1.bf16.msra.mxu0 %v2878_v50  ;;  %2268 = vmatpush1.bf16.msra.mxu1 %v2891_v54 }
 0x339   :  { %2238 = vmatprep.subr.bf16.mxu0 %v2904_v58  ;;  %2270 = vmatprep.subr.bf16.mxu1 %v2914_v61 }
 0x33c   :  { %2240 = vmatpush1.bf16.msra.mxu0 %v2927_v1  ;;  %2272 = vmatpush1.bf16.msra.mxu1 %v2937_v5 }
 0x33d   :  { %2242 = vmatprep.subr.bf16.mxu0 %v2947_v8  ;;  %2274 = vmatprep.subr.bf16.mxu1 %v2957_v11 }
 0x340   :  { %2244 = vmatpush1.bf16.msra.mxu0 %v2970_v15  ;;  %2276 = vmatpush1.bf16.msra.mxu1 %v2980_v18 }
 0x341   :  { %2246 = vmatprep.subr.bf16.mxu0 %v2990_v21  ;;  %2278 = vmatprep.subr.bf16.mxu1 %v3000_v24 }
 0x344   :  { %2248 = vmatpush1.bf16.msra.mxu0 %v3013_v28  ;;  %2280 = vmatpush1.bf16.msra.mxu1 %v3023_v32 }
 0x345   :  { %2250 = vmatprep.subr.bf16.mxu0 %v3033_v37  ;;  %2282 = vmatprep.subr.bf16.mxu1 %v3043_v41 }
 0x348   :  { %2252 = vmatpush1.bf16.msra.mxu0 %v3056_v46  ;;  %2284 = vmatpush1.bf16.msra.mxu1 %v3066_v51 }
 0x349   :  { %2254 = vmatprep.subr.bf16.mxu0 %v3076_v55  ;;  %2286 = vmatprep.subr.bf16.mxu1 %v3086_v59 }
 0x34c   :  { %2256 = vmatpush1.bf16.msra.mxu0 %v3099_v0  ;;  %2288 = vmatpush1.bf16.msra.mxu1 %v3109_v6 }
 0x34d   :  { %2258 = vmatprep.subr.bf16.mxu0 %v3119_v10  ;;  %2290 = vmatprep.subr.bf16.mxu1 %v3129_v14 }
 0x350   :  { %2260 = vmatpush1.bf16.msra.mxu0 %v3136_v17  ;;  %2292 = vmatpush1.bf16.msra.mxu1 %v3140_v19 }
 0x351   :  { %2294 = vmatprep.subr.bf16.mxu0 %v2812_v29  ;;  %2326 = vmatprep.subr.bf16.mxu1 %v2828_v34 }
 0x406   :  { %v973_v22 = vpop.f32.mrb[6].mxu0  ;;  %v1044_v23 = vpop.f32.mrb[6].mxu1 }
 0x407   :  { %v2515_v33 = vadd.f32 %v973_v22, %v3192_v27  ;;  %v975_v36 = vpop.f32.mrb[7].mxu0  ;;  %v1046_v39 = vpop.f32.mrb[7].mxu1  ;;  %v2531_v52 = vadd.f32 %v1044_v23, %v3201_v56 }
 0x408   :  { %v2516_v40 = vadd.f32 %v975_v36, %v3194_v30  ;;  %v2532_v45 = vadd.f32 %v1046_v39, %v3198_v49 }
 0x409   :  { %v1885_v43 = vmul.f32 -1.442695, %v2515_v33 }
 0x40a   :  { %v1886_v44 = vmul.f32 -1.442695, %v2516_v40  ;;  %v1887_v48 = vmul.f32 -1.442695, %v2532_v45 }
 0x40b   :  { %2625 = vpow2.f32 %v1885_v43 }
 0x40c   :  { %2627 = vpow2.f32 %v1886_v44 }
 0x40d   :  { %2629 = vpow2.f32 %v1887_v48 }
 0x40e   :  { %2631 = vtanh.f32 %v2531_v52 }
 0x415   :  { %v2626_v53 = vpop.eup %2625 }
 0x416   :  { %v2628_v57 = vpop.eup %2627  ;;  %v1056_v60 = vadd.f32 1.0, %v2626_v53 }
 0x417   :  { %v1062_v62 = vadd.f32 1.0, %v2628_v57  ;;  %v2630_v63 = vpop.eup %2629 }
 0x418   :  { %2633 = vrcp.f32 %v1056_v60  ;;  %v2632_v2 = vpop.eup %2631  ;;  %v1069_v12 = vadd.f32 1.0, %v2630_v63 }
 0x419   :  { %2635 = vrcp.f32 %v1062_v62 }
 0x41a   :  { %2637 = vrcp.f32 %v1069_v12 }
 0x422   :  { %v2634_v4 = vpop.eup %2633 }
 0x423   :  { %v2636_v7 = vpop.eup %2635  ;;  %v1073_v9 = vmul.f32 %v2634_v4, %v2632_v2 }
 0x424   :  { %v1072_v13 = vmul.f32 %v2636_v7, %v3288_v20  ;;  %v2638_v25 = vpop.eup %2637 }
 0x426   :  { %v3330_v16 = vadd.f32 %v1073_v9, %v1072_v13 }
 0x428   :  { %2639 = vtanh.f32 %v3330_v16 }
 0x432   :  { %v2640_v26 = vpop.eup %2639 }
 0x433   :  { %v1076_v31 = vmul.f32 %v2640_v26, %v2638_v25 }
 0x435   :  { %1142 = vmatmul.mubr.f32.vlgmr.msra.gmra.mrb[8].mxu0 %v1076_v31  ;;  %1213 = vmatmul.mubr.f32.vlgmr.msra.gmra.mrb[8].mxu1 %v1076_v31 }
 0x436   :  { %2296 = vmatpush1.bf16.msra.mxu0 %v2830_v35  ;;  %2328 = vmatpush1.bf16.msra.mxu1 %v2841_v38 }
 0x437   :  { %2298 = vmatprep.subr.bf16.mxu0 %v2853_v42  ;;  %2330 = vmatprep.subr.bf16.mxu1 %v2868_v47 }
 0x438   :  { %1311 = vmatprep.mubr.f32.mxu0 %v2705_v3  ;;  %1382 = vmatprep.mubr.f32.mxu1 %v2705_v3 }
 0x43a   :  { %2300 = vmatpush1.bf16.msra.mxu0 %v2878_v50  ;;  %2332 = vmatpush1.bf16.msra.mxu1 %v2891_v54 }
 0x43b   :  { %2302 = vmatprep.subr.bf16.mxu0 %v2904_v58  ;;  %2334 = vmatprep.subr.bf16.mxu1 %v2914_v61 }
 0x43e   :  { %2304 = vmatpush1.bf16.msra.mxu0 %v2927_v1  ;;  %2336 = vmatpush1.bf16.msra.mxu1 %v2937_v5 }
 0x43f   :  { %2306 = vmatprep.subr.bf16.mxu0 %v2947_v8  ;;  %2338 = vmatprep.subr.bf16.mxu1 %v2957_v11 }
 0x442   :  { %2308 = vmatpush1.bf16.msra.mxu0 %v2970_v15  ;;  %2340 = vmatpush1.bf16.msra.mxu1 %v2980_v18 }
 0x443   :  { %2310 = vmatprep.subr.bf16.mxu0 %v2990_v21  ;;  %2342 = vmatprep.subr.bf16.mxu1 %v3000_v24 }
 0x446   :  { %2312 = vmatpush1.bf16.msra.mxu0 %v3013_v28  ;;  %2344 = vmatpush1.bf16.msra.mxu1 %v3023_v32 }
 0x447   :  { %2314 = vmatprep.subr.bf16.mxu0 %v3033_v37  ;;  %2346 = vmatprep.subr.bf16.mxu1 %v3043_v41 }
 0x44a   :  { %2316 = vmatpush1.bf16.msra.mxu0 %v3056_v46  ;;  %2348 = vmatpush1.bf16.msra.mxu1 %v3066_v51 }
 0x44b   :  { %2318 = vmatprep.subr.bf16.mxu0 %v3076_v55  ;;  %2350 = vmatprep.subr.bf16.mxu1 %v3086_v59 }
 0x44e   :  { %2320 = vmatpush1.bf16.msra.mxu0 %v3099_v0  ;;  %2352 = vmatpush1.bf16.msra.mxu1 %v3109_v6 }
 0x44f   :  { %2322 = vmatprep.subr.bf16.mxu0 %v3119_v10  ;;  %2354 = vmatprep.subr.bf16.mxu1 %v3129_v14 }
 0x452   :  { %2324 = vmatpush1.bf16.msra.mxu0 %v3136_v17  ;;  %2356 = vmatpush1.bf16.msra.mxu1 %v3140_v19 }
 0x453   :  { %2358 = vmatprep.subr.bf16.mxu0 %v2812_v29  ;;  %2390 = vmatprep.subr.bf16.mxu1 %v2828_v34 }
 0x508   :  { %v1143_v20 = vpop.f32.mrb[8].mxu0  ;;  %v1214_v22 = vpop.f32.mrb[8].mxu1 }
 0x509   :  { %v2517_v23 = vadd.f32 %v1143_v20, %v3192_v27  ;;  %v1145_v33 = vpop.f32.mrb[9].mxu0  ;;  %v1216_v36 = vpop.f32.mrb[9].mxu1  ;;  %v2533_v48 = vadd.f32 %v1214_v22, %v3201_v56 }
 0x50a   :  { %v2518_v39 = vadd.f32 %v1145_v33, %v3194_v30  ;;  %v2534_v44 = vadd.f32 %v1216_v36, %v3198_v49 }
 0x50b   :  { %v1888_v40 = vmul.f32 -1.442695, %v2517_v23 }
 0x50c   :  { %v1889_v43 = vmul.f32 -1.442695, %v2518_v39  ;;  %v1890_v45 = vmul.f32 -1.442695, %v2534_v44 }
 0x50d   :  { %2641 = vpow2.f32 %v1888_v40 }
 0x50e   :  { %2643 = vpow2.f32 %v1889_v43 }
 0x50f   :  { %2645 = vpow2.f32 %v1890_v45 }
 0x510   :  { %2647 = vtanh.f32 %v2533_v48 }
 0x517   :  { %v2642_v52 = vpop.eup %2641 }
 0x518   :  { %v2644_v53 = vpop.eup %2643  ;;  %v1226_v57 = vadd.f32 1.0, %v2642_v52 }
 0x519   :  { %v1232_v60 = vadd.f32 1.0, %v2644_v53  ;;  %v2646_v62 = vpop.eup %2645 }
 0x51a   :  { %2649 = vrcp.f32 %v1226_v57  ;;  %v2648_v63 = vpop.eup %2647  ;;  %v1239_v9 = vadd.f32 1.0, %v2646_v62 }
 0x51b   :  { %2651 = vrcp.f32 %v1232_v60 }
 0x51c   :  { %2653 = vrcp.f32 %v1239_v9 }
 0x524   :  { %v2650_v2 = vpop.eup %2649 }
 0x525   :  { %v2652_v4 = vpop.eup %2651  ;;  %v1243_v7 = vmul.f32 %v2650_v2, %v2648_v63 }
 0x526   :  { %v1242_v12 = vmul.f32 %v2652_v4, %v3330_v16  ;;  %v2654_v25 = vpop.eup %2653 }
 0x528   :  { %v3372_v13 = vadd.f32 %v1243_v7, %v1242_v12 }
 0x52a   :  { %2655 = vtanh.f32 %v3372_v13 }
 0x534   :  { %v2656_v26 = vpop.eup %2655 }
 0x535   :  { %v1246_v31 = vmul.f32 %v2656_v26, %v2654_v25  ;;  %v1760_v26 = vld [vmem:[%s3521_s4 + $0x18] sm:$0xff] }
 0x537   :  { %1312 = vmatmul.mubr.f32.vlgmr.msra.gmra.mrb[10].mxu0 %v1246_v31  ;;  %1383 = vmatmul.mubr.f32.vlgmr.msra.gmra.mrb[10].mxu1 %v1246_v31 }
 0x538   :  { %2360 = vmatpush1.bf16.msra.mxu0 %v2830_v35  ;;  %2392 = vmatpush1.bf16.msra.mxu1 %v2841_v38 }
 0x539   :  { %2362 = vmatprep.subr.bf16.mxu0 %v2853_v42  ;;  %2394 = vmatprep.subr.bf16.mxu1 %v2868_v47 }
 0x53a   :  { %1481 = vmatprep.mubr.f32.mxu0 %v2705_v3  ;;  %1552 = vmatprep.mubr.f32.mxu1 %v2705_v3 }
 0x53c   :  { %2364 = vmatpush1.bf16.msra.mxu0 %v2878_v50  ;;  %2396 = vmatpush1.bf16.msra.mxu1 %v2891_v54 }
 0x53d   :  { %2366 = vmatprep.subr.bf16.mxu0 %v2904_v58  ;;  %2398 = vmatprep.subr.bf16.mxu1 %v2914_v61 }
 0x540   :  { %2368 = vmatpush1.bf16.msra.mxu0 %v2927_v1  ;;  %2400 = vmatpush1.bf16.msra.mxu1 %v2937_v5 }
 0x541   :  { %2370 = vmatprep.subr.bf16.mxu0 %v2947_v8  ;;  %2402 = vmatprep.subr.bf16.mxu1 %v2957_v11 }
 0x544   :  { %2372 = vmatpush1.bf16.msra.mxu0 %v2970_v15  ;;  %2404 = vmatpush1.bf16.msra.mxu1 %v2980_v18 }
 0x545   :  { %2374 = vmatprep.subr.bf16.mxu0 %v2990_v21  ;;  %2406 = vmatprep.subr.bf16.mxu1 %v3000_v24 }
 0x548   :  { %2376 = vmatpush1.bf16.msra.mxu0 %v3013_v28  ;;  %2408 = vmatpush1.bf16.msra.mxu1 %v3023_v32 }
 0x549   :  { %2378 = vmatprep.subr.bf16.mxu0 %v3033_v37  ;;  %2410 = vmatprep.subr.bf16.mxu1 %v3043_v41 }
 0x54c   :  { %2380 = vmatpush1.bf16.msra.mxu0 %v3056_v46  ;;  %2412 = vmatpush1.bf16.msra.mxu1 %v3066_v51 }
 0x54d   :  { %2382 = vmatprep.subr.bf16.mxu0 %v3076_v55  ;;  %2414 = vmatprep.subr.bf16.mxu1 %v3086_v59 }
 0x550   :  { %2384 = vmatpush1.bf16.msra.mxu0 %v3099_v0  ;;  %2416 = vmatpush1.bf16.msra.mxu1 %v3109_v6 }
 0x551   :  { %2386 = vmatprep.subr.bf16.mxu0 %v3119_v10  ;;  %2418 = vmatprep.subr.bf16.mxu1 %v3129_v14 }
 0x554   :  { %2388 = vmatpush1.bf16.msra.mxu0 %v3136_v17  ;;  %2420 = vmatpush1.bf16.msra.mxu1 %v3140_v19 }
 0x555   :  { %2422 = vmatprep.subr.bf16.mxu0 %v2812_v29  ;;  %2454 = vmatprep.subr.bf16.mxu1 %v2828_v34 }
 0x60a   :  { %v1313_v16 = vpop.f32.mrb[10].mxu0  ;;  %v1384_v20 = vpop.f32.mrb[10].mxu1 }
 0x60b   :  { %v2519_v22 = vadd.f32 %v1313_v16, %v3192_v27  ;;  %v1315_v23 = vpop.f32.mrb[11].mxu0  ;;  %v1386_v33 = vpop.f32.mrb[11].mxu1  ;;  %v2535_v45 = vadd.f32 %v1384_v20, %v3201_v56  ;;  %v1761_v16 = vld [vmem:[%s3521_s4 + $0x20] sm:$0xff]  ;;  %v1762_v20 = vld [vmem:[%s3521_s4 + $0x28] sm:$0xff] }
 0x60c   :  { %v2520_v36 = vadd.f32 %v1315_v23, %v3194_v30  ;;  %v2536_v43 = vadd.f32 %v1386_v33, %v3198_v49  ;;  %v1763_v23 = vld [vmem:[%s3521_s4 + $0x30] sm:$0xff]  ;;  %v1764_v33 = vld [vmem:[%s3521_s4 + $0x38] sm:$0xff] }
 0x60d   :  { %v1891_v39 = vmul.f32 -1.442695, %v2519_v22  ;;  %v2492_v22 = vpack.c.bf16 %v1762_v20, %v1761_v16 }
 0x60e   :  { %v1892_v40 = vmul.f32 -1.442695, %v2520_v36  ;;  %v1893_v44 = vmul.f32 -1.442695, %v2536_v43  ;;  %v2495_v36 = vpack.c.bf16 %v1764_v33, %v1763_v23 }
 0x60f   :  { %2657 = vpow2.f32 %v1891_v39  ;;  %v1765_v39 = vld [vmem:[%s3521_s4 + $0x40] sm:$0xff] }
 0x610   :  { %2659 = vpow2.f32 %v1892_v40  ;;  %v1766_v40 = vld [vmem:[%s3521_s4 + $0x48] sm:$0xff] }
 0x611   :  { %2661 = vpow2.f32 %v1893_v44  ;;  %v2498_v43 = vpack.c.bf16 %v1766_v40, %v1765_v39  ;;  %v1767_v44 = vld [vmem:[%s3521_s4 + $0x50] sm:$0xff] }
 0x612   :  { %2663 = vtanh.f32 %v2535_v45  ;;  %v1768_v45 = vld [vmem:[%s3521_s4 + $0x58] sm:$0xff] }
 0x619   :  { %v2658_v29 = vpop.eup %2657 }
 0x61a   :  { %v2660_v48 = vpop.eup %2659  ;;  %v1396_v34 = vadd.f32 1.0, %v2658_v29  ;;  %v1769_v29 = vld [vmem:[%s3521_s4 + $0x60] sm:$0xff] }
 0x61b   :  { %v1402_v52 = vadd.f32 1.0, %v2660_v48  ;;  %v2662_v53 = vpop.eup %2661  ;;  %v2501_v48 = vpack.c.bf16 %v1768_v45, %v1767_v44 }
 0x61c   :  { %2665 = vrcp.f32 %v1396_v34  ;;  %v2664_v57 = vpop.eup %2663  ;;  %v1409_v2 = vadd.f32 1.0, %v2662_v53  ;;  %v1770_v34 = vld [vmem:[%s3521_s4 + $0x68] sm:$0xff]  ;;  %v1771_v53 = vld [vmem:[%s3521_s4 + $0x70] sm:$0xff] }
 0x61d   :  { %2667 = vrcp.f32 %v1402_v52  ;;  %v2504_v52 = vpack.c.bf16 %v1770_v34, %v1769_v29 }
 0x61e   :  { %2669 = vrcp.f32 %v1409_v2 }
 0x626   :  { %v2666_v60 = vpop.eup %2665 }
 0x627   :  { %v2668_v62 = vpop.eup %2667  ;;  %v1413_v63 = vmul.f32 %v2666_v60, %v2664_v57  ;;  %v1772_v57 = vld [vmem:[%s3521_s4 + $0x78] sm:$0xff] }
 0x628   :  { %v1412_v4 = vmul.f32 %v2668_v62, %v3372_v13  ;;  %v2670_v9 = vpop.eup %2669  ;;  %v1759_v13 = vld [vmem:[%s3521_s4 + $0x10] sm:$0xff]  ;;  %v2507_v60 = vpack.c.bf16 %v1772_v57, %v1771_v53 }
 0x629   :  { %v2489_v31 = vpack.c.bf16 %v1760_v26, %v1759_v13 }
 0x62a   :  { %v3414_v7 = vadd.f32 %v1413_v63, %v1412_v4 }
 0x62c   :  { %2671 = vtanh.f32 %v3414_v7 }
 0x636   :  { %v2672_v12 = vpop.eup %2671 }
 0x637   :  { %v1416_v25 = vmul.f32 %v2672_v12, %v2670_v9 }
 0x639   :  { %1482 = vmatmul.mubr.f32.vlgmr.msra.gmra.mrb[12].mxu0 %v1416_v25  ;;  %1553 = vmatmul.mubr.f32.vlgmr.msra.gmra.mrb[12].mxu1 %v1416_v25 }
 0x63a   :  { %2424 = vmatpush1.bf16.msra.mxu0 %v2830_v35  ;;  %2456 = vmatpush1.bf16.msra.mxu1 %v2841_v38 }
 0x63b   :  { %2426 = vmatprep.subr.bf16.mxu0 %v2853_v42  ;;  %2458 = vmatprep.subr.bf16.mxu1 %v2868_v47 }
 0x63c   :  { %1651 = vmatprep.mubr.f32.mxu0 %v2705_v3  ;;  %1722 = vmatprep.mubr.f32.mxu1 %v2705_v3 }
 0x63e   :  { %2428 = vmatpush1.bf16.msra.mxu0 %v2878_v50  ;;  %2460 = vmatpush1.bf16.msra.mxu1 %v2891_v54 }
 0x63f   :  { %2430 = vmatprep.subr.bf16.mxu0 %v2904_v58  ;;  %2462 = vmatprep.subr.bf16.mxu1 %v2914_v61 }
 0x642   :  { %2432 = vmatpush1.bf16.msra.mxu0 %v2927_v1  ;;  %2464 = vmatpush1.bf16.msra.mxu1 %v2937_v5 }
 0x643   :  { %2434 = vmatprep.subr.bf16.mxu0 %v2947_v8  ;;  %2466 = vmatprep.subr.bf16.mxu1 %v2957_v11 }
 0x646   :  { %2436 = vmatpush1.bf16.msra.mxu0 %v2970_v15  ;;  %2468 = vmatpush1.bf16.msra.mxu1 %v2980_v18 }
 0x647   :  { %2438 = vmatprep.subr.bf16.mxu0 %v2990_v21  ;;  %2470 = vmatprep.subr.bf16.mxu1 %v3000_v24 }
 0x64a   :  { %2440 = vmatpush1.bf16.msra.mxu0 %v3013_v28  ;;  %2472 = vmatpush1.bf16.msra.mxu1 %v3023_v32 }
 0x64b   :  { %2442 = vmatprep.subr.bf16.mxu0 %v3033_v37  ;;  %2474 = vmatprep.subr.bf16.mxu1 %v3043_v41 }
 0x64e   :  { %2444 = vmatpush1.bf16.msra.mxu0 %v3056_v46  ;;  %2476 = vmatpush1.bf16.msra.mxu1 %v3066_v51 }
 0x64f   :  { %2446 = vmatprep.subr.bf16.mxu0 %v3076_v55  ;;  %2478 = vmatprep.subr.bf16.mxu1 %v3086_v59 }
 0x652   :  { %2448 = vmatpush1.bf16.msra.mxu0 %v3099_v0  ;;  %2480 = vmatpush1.bf16.msra.mxu1 %v3109_v6 }
 0x653   :  { %2450 = vmatprep.subr.bf16.mxu0 %v3119_v10  ;;  %2482 = vmatprep.subr.bf16.mxu1 %v3129_v14  ;;  %v1757_v10 = vld [vmem:[%s3521_s4] sm:$0xff]  ;;  %v1758_v14 = vld [vmem:[%s3521_s4 + $0x8] sm:$0xff] }
 0x656   :  { %2452 = vmatpush1.bf16.msra.mxu0 %v3136_v17  ;;  %2484 = vmatpush1.bf16.msra.mxu1 %v3140_v19  ;;  %v2486_v17 = vpack.c.bf16 %v1758_v14, %v1757_v10  ;;  %v2707_v19 = vmov 0.0|0.0  }
 0x657   :  { %2485 = vmatprep.subr.bf16.mxu0 %v2707_v19 }
 0x70c   :  { %v1483_v35 = vpop.f32.mrb[12].mxu0  ;;  %v1554_v38 = vpop.f32.mrb[12].mxu1 }
 0x70d   :  { %v2521_v42 = vadd.f32 %v1483_v35, %v3192_v27  ;;  %v1485_v47 = vpop.f32.mrb[13].mxu0  ;;  %v1556_v50 = vpop.f32.mrb[13].mxu1  ;;  %v2537_v8 = vadd.f32 %v1554_v38, %v3201_v56 }
 0x70e   :  { %v2522_v54 = vadd.f32 %v1485_v47, %v3194_v30  ;;  %v2538_v1 = vadd.f32 %v1556_v50, %v3198_v49 }
 0x70f   :  { %v1894_v58 = vmul.f32 -1.442695, %v2521_v42 }
 0x710   :  { %v1895_v61 = vmul.f32 -1.442695, %v2522_v54  ;;  %v1896_v5 = vmul.f32 -1.442695, %v2538_v1 }
 0x711   :  { %2673 = vpow2.f32 %v1894_v58 }
 0x712   :  { %2675 = vpow2.f32 %v1895_v61 }
 0x713   :  { %2677 = vpow2.f32 %v1896_v5 }
 0x714   :  { %2679 = vtanh.f32 %v2537_v8 }
 0x71b   :  { %v2674_v11 = vpop.eup %2673 }
 0x71c   :  { %v2676_v15 = vpop.eup %2675  ;;  %v1566_v18 = vadd.f32 1.0, %v2674_v11 }
 0x71d   :  { %v1572_v21 = vadd.f32 1.0, %v2676_v15  ;;  %v2678_v24 = vpop.eup %2677 }
 0x71e   :  { %2681 = vrcp.f32 %v1566_v18  ;;  %v2680_v28 = vpop.eup %2679  ;;  %v1579_v46 = vadd.f32 1.0, %v2678_v24  ;;  %v1900_v18 = vld [vmem:[%s3522_s5] ss:$0 sm:$0xff] }
 0x71f   :  { %2683 = vrcp.f32 %v1572_v21 }
 0x720   :  { %2685 = vrcp.f32 %v1579_v46 }
 0x728   :  { %v2682_v32 = vpop.eup %2681 }
 0x729   :  { %v2684_v37 = vpop.eup %2683  ;;  %v1583_v41 = vmul.f32 %v2682_v32, %v2680_v28 }
 0x72a   :  { %v1582_v51 = vmul.f32 %v2684_v37, %v3414_v7  ;;  %v2686_v59 = vpop.eup %2685 }
 0x72c   :  { %v3454_v55 = vadd.f32 %v1583_v41, %v1582_v51 }
 0x72e   :  { %2687 = vtanh.f32 %v3454_v55 }
 0x738   :  { %v2688_v0 = vpop.eup %2687 }
 0x739   :  { %v1586_v6 = vmul.f32 %v2688_v0, %v2686_v59 }
 0x73b   :  { %1652 = vmatmul.mubr.f32.vlgmr.msra.gmra.mrb[14].mxu0 %v1586_v6  ;;  %1723 = vmatmul.mubr.f32.vlgmr.msra.gmra.mrb[14].mxu1 %v1586_v6 }
 0x73c   :  { %2487 = vmatpush3.bf16.msra.mxu0 %v2486_v17  ;;  %1950 = vmatprep.mubr.msk.f32.mxu0 %vm2708_vm4, %v2705_v3 }
 0x73d   :  { %2488 = vmatprep.subr.bf16.mxu0 %v2707_v19 }
 0x740   :  { %2490 = vmatpush3.bf16.msra.mxu0 %v2489_v31 }
 0x741   :  { %2491 = vmatprep.subr.bf16.mxu0 %v2707_v19 }
 0x744   :  { %2493 = vmatpush3.bf16.msra.mxu0 %v2492_v22 }
 0x745   :  { %2494 = vmatprep.subr.bf16.mxu0 %v2707_v19 }
 0x748   :  { %2496 = vmatpush3.bf16.msra.mxu0 %v2495_v36 }
 0x749   :  { %2497 = vmatprep.subr.bf16.mxu0 %v2707_v19 }
 0x74c   :  { %2499 = vmatpush3.bf16.msra.mxu0 %v2498_v43 }
 0x74d   :  { %2500 = vmatprep.subr.bf16.mxu0 %v2707_v19 }
 0x750   :  { %2502 = vmatpush3.bf16.msra.mxu0 %v2501_v48 }
 0x751   :  { %2503 = vmatprep.subr.bf16.mxu0 %v2707_v19 }
 0x754   :  { %2505 = vmatpush3.bf16.msra.mxu0 %v2504_v52 }
 0x755   :  { %2506 = vmatprep.subr.bf16.mxu0 %v2707_v19 }
 0x758   :  { %2508 = vmatpush3.bf16.msra.mxu0 %v2507_v60 }
 0x80e   :  { %v1653_v62 = vpop.f32.mrb[14].mxu0  ;;  %v1724_v63 = vpop.f32.mrb[14].mxu1 }
 0x80f   :  { %v2523_v2 = vadd.f32 %v1653_v62, %v3192_v27  ;;  %v1655_v3 = vpop.f32.mrb[15].mxu0  ;;  %v1726_v4 = vpop.f32.mrb[15].mxu1  ;;  %v2539_v38 = vadd.f32 %v1724_v63, %v3201_v56 }
 0x810   :  { %v2524_v7 = vadd.f32 %v1655_v3, %v3194_v30  ;;  %v2540_v25 = vadd.f32 %v1726_v4, %v3198_v49 }
 0x811   :  { %v1897_v9 = vmul.f32 -1.442695, %v2523_v2 }
 0x812   :  { %v1898_v12 = vmul.f32 -1.442695, %v2524_v7  ;;  %v1899_v35 = vmul.f32 -1.442695, %v2540_v25 }
 0x813   :  { %2689 = vpow2.f32 %v1897_v9 }
 0x814   :  { %2691 = vpow2.f32 %v1898_v12 }
 0x815   :  { %2693 = vpow2.f32 %v1899_v35 }
 0x816   :  { %2695 = vtanh.f32 %v2539_v38 }
 0x81d   :  { %v2690_v42 = vpop.eup %2689 }
 0x81e   :  { %v2692_v47 = vpop.eup %2691  ;;  %v1736_v50 = vadd.f32 1.0, %v2690_v42 }
 0x81f   :  { %v1742_v54 = vadd.f32 1.0, %v2692_v47  ;;  %v2694_v27 = vpop.eup %2693 }
 0x820   :  { %2697 = vrcp.f32 %v1736_v50  ;;  %v2696_v58 = vpop.eup %2695  ;;  %v1749_v5 = vadd.f32 1.0, %v2694_v27 }
 0x821   :  { %2699 = vrcp.f32 %v1742_v54 }
 0x822   :  { %2701 = vrcp.f32 %v1749_v5 }
 0x82a   :  { %v2698_v30 = vpop.eup %2697 }
 0x82b   :  { %v2700_v61 = vpop.eup %2699  ;;  %v1753_v1 = vmul.f32 %v2698_v30, %v2696_v58 }
 0x82c   :  { %v1752_v8 = vmul.f32 %v2700_v61, %v3454_v55  ;;  %v2702_v56 = vpop.eup %2701 }
 0x82e   :  { %v1754_v49 = vadd.f32 %v1753_v1, %v1752_v8 }
 0x830   :  { %2703 = vtanh.f32 %v1754_v49 }
 0x83a   :  { %v2704_v11 = vpop.eup %2703 }
 0x83b   :  { %v1756_v15 = vmul.f32 %v2704_v11, %v2702_v56 }
 0x83d   :  { %1951 = vmatmul.mubr.f32.vlgmr.msra.gmra.mrb[16].mxu0 %v1756_v15 }
 0x910   :  { %v1846_v21 = vpop.f32.mrb[16].mxu0 }
 0x911   :  { %v1847_v24 = vadd.f32 %v1900_v18, %v1846_v21  ;;  %v1952_v28 = vpop.f32.mrb[17].mxu0 }
 0x913   :  { %1851 = vst.msk [vmem:[%s3523_s6] sm:$0xff] %vm1850_vm5, %v1847_v24 }

</bundles_post_ra>
